<compile_context>
chip_gen: v7x
topology: tpu7x:2x2x1
jax: 0.10.0
libtpu: 0.0.40
codegen_flags: <defaults>
</compile_context>

<pallas_src>
import functools

import jax
import jax.numpy as jnp
from jax import lax
from jax.experimental import pallas as pl
from jax.experimental.pallas import tpu as pltpu


# ------------------------- VGG "features" definition ------------------------ #

# Small VGG-style feature config: conv output channels and 'M' for 2x2 maxpool.
CFG = (8, "M", 16, "M")
IN_CHANNELS = 3


def init_vgg_params(key, cfg=CFG, in_channels=IN_CHANNELS):
    """Kaiming-normal(fan_out, relu) conv weights, zero biases (vgg.__init__)."""
    params = []
    c_in = in_channels
    for v in cfg:
        if v == "M":
            continue
        c_out = int(v)
        key, sub = jax.random.split(key)
        fan_out = c_out * 3 * 3
        std = (2.0 / fan_out) ** 0.5
        w = std * jax.random.normal(sub, (3, 3, c_in, c_out), dtype=jnp.float32)
        b = jnp.zeros((c_out,), dtype=jnp.float32)
        params.append((w, b))
        c_in = c_out
    return params


# ---------------------- host-side conv -> banded GEMM ----------------------- #

def _expand_conv_weight(w_hwio, width):
    """Expand a 3x3 HWIO conv weight into 3 banded GEMM matrices.

    Returns (3, Cin*width, Cout*width) with
      M[kh, wi*Cin + ci, wo*Cout + co] = w[kh, kw, ci, co]  where wi = wo+kw-1,
    zero elsewhere.  The band structure folds both the horizontal shift and the
    padding=1 zero-padding in W into the matrix, so in-kernel a conv tap is a
    single dense matmul over lane index (w*C + c).
    """
    KH, KW, Cin, Cout = w_hwio.shape
    mats = []
    for kh in range(KH):
        m = jnp.zeros((Cin * width, Cout * width), dtype=w_hwio.dtype)
        for kw in range(KW):
            band = jnp.eye(width, width, k=1 - kw, dtype=w_hwio.dtype)
            m = m + jnp.kron(band, w_hwio[kh, kw])
        mats.append(m)
    return jnp.stack(mats, axis=0)


# ----------------------------- fused Pallas kernel -------------------------- #

def _make_fused_vgg_kernel(cfg, in_channels):
    """Builds a kernel running the whole cfg on one image per grid step."""
    cfg = tuple(cfg)

    def kernel(*refs):
        # refs = (x_ref, [w_ref, b_ref] per conv ..., o_ref, pad_scratch)
        x_ref = refs[0]
        o_ref = refs[-2]
        pad_ref = refs[-1]
        conv_refs = refs[1:-2]

        a = x_ref[0]               # (H, W*C) activation, lane = w*C + c
        c = in_channels
        ri = 0
        for v in cfg:
            if v == "M":
                h, L = a.shape
                # 2x2 / stride-2 maxpool, fully in-register.
                t = jnp.max(a.reshape(h // 2, 2, L), axis=1)       # pool rows
                t = t.reshape(h // 2, L // (2 * c), 2 * c)
                t = jnp.maximum(t[:, :, :c], t[:, :, c:])          # pool cols
                a = t.reshape(h // 2, L // 2)
            else:
                w_ref, b_ref = conv_refs[ri], conv_refs[ri + 1]
                ri += 2
                h, L = a.shape
                # Zero-padded row halo kept in a small VMEM scratch.
                pad_ref[...] = jnp.zeros(pad_ref.shape, pad_ref.dtype)
                pad_ref[1:h + 1, 0:L] = a
                # 3x3 conv == 3 lane-dense GEMMs against banded weights
                # (kw shift + W padding already folded into w_ref).
                acc = jnp.dot(pad_ref[0:h, 0:L], w_ref[0],
                              preferred_element_type=jnp.float32)
                acc = acc + jnp.dot(pad_ref[1:h + 1, 0:L], w_ref[1],
                                    preferred_element_type=jnp.float32)
                acc = acc + jnp.dot(pad_ref[2:h + 2, 0:L], w_ref[2],
                                    preferred_element_type=jnp.float32)
                a = jnp.maximum(acc + b_ref[...], 0.0)             # bias + ReLU
                c = int(v)
        o_ref[0] = a.astype(o_ref.dtype)

    return kernel


# ------------------------------ public forward ------------------------------ #

@functools.partial(jax.jit, static_argnames=("cfg",))
def vgg_forward(x_nchw, params, cfg=CFG):
    """Matches vgg.forward: returns features(x). NCHW in, NCHW out."""
    N, c, h, w = x_nchw.shape

    # NCHW -> channels-minor rows (N, H, W*C): lane = w*C + c.
    operands = [jnp.transpose(x_nchw, (0, 2, 3, 1)).reshape(N, h, w * c)]
    in_specs = [pl.BlockSpec((1, h, w * c), lambda n: (n, 0, 0))]

    pad_rows, pad_lanes = h + 2, w * c     # VMEM halo scratch sizing
    pi = 0
    for v in cfg:
        if v == "M":
            # TODO(synk): PyTorch MaxPool2d(2,2) floors odd spatial dims; this
            # fused kernel requires even H/W (true for this cfg).
            assert h % 2 == 0 and w % 2 == 0, "maxpool needs even spatial dims"
            h, w = h // 2, w // 2
        else:
            cw, cb = params[pi]
            pi += 1
            cout = int(v)
            we = _expand_conv_weight(cw, w)                  # (3, c*w, cout*w)
            be = jnp.tile(cb, w).reshape(1, cout * w)        # lane = w*Cout + co
            operands += [we, be]
            in_specs += [
                pl.BlockSpec((3, c * w, cout * w), lambda n: (0, 0, 0)),
                pl.BlockSpec((1, cout * w), lambda n: (0, 0)),
            ]
            pad_rows = max(pad_rows, h + 2)
            pad_lanes = max(pad_lanes, c * w)
            c = cout

    out = pl.pallas_call(
        _make_fused_vgg_kernel(cfg, x_nchw.shape[1]),
        out_shape=jax.ShapeDtypeStruct((N, h, c * w), jnp.float32),
        grid=(N,),
        in_specs=in_specs,
        out_specs=pl.BlockSpec((1, h, c * w), lambda n: (n, 0, 0)),
        scratch_shapes=[pltpu.VMEM((pad_rows, pad_lanes), jnp.float32)],
        compiler_params=pltpu.CompilerParams(
            dimension_semantics=("parallel",)),
    )(*operands)

    # (N, H', W'*C') -> NHWC -> NCHW
    return jnp.transpose(out.reshape(N, h, w, c), (0, 3, 1, 2))


# --------------------------------- reference -------------------------------- #

def vgg_forward_ref(x_nchw, params, cfg=CFG):
    x = jnp.transpose(x_nchw, (0, 2, 3, 1))
    pi = 0
    for v in cfg:
        if v == "M":
            x = lax.reduce_window(x, -jnp.inf, lax.max,
                                  (1, 2, 2, 1), (1, 2, 2, 1), "VALID")
        else:
            w, b = params[pi]
            pi += 1
            x = lax.conv_general_dilated(
                x, w, window_strides=(1, 1), padding=((1, 1), (1, 1)),
                dimension_numbers=("NHWC", "HWIO", "NHWC"),
                precision=lax.Precision.HIGHEST)
            x = jnp.maximum(x + b, 0.0)
    return jnp.transpose(x, (0, 3, 1, 2))


# ----------------------------------- main ------------------------------------ #

if __name__ == "__main__":
    key = jax.random.PRNGKey(0)
    kp, kx = jax.random.split(key)

    params = init_vgg_params(kp)
    x = jax.random.normal(kx, (2, IN_CHANNELS, 16, 16), dtype=jnp.float32)  # NCHW

    out = jax.block_until_ready(vgg_forward(x, params))
    ref = vgg_forward_ref(x, params)

    assert out.shape == ref.shape, (out.shape, ref.shape)
    assert jnp.allclose(out, ref, rtol=1e-4, atol=1e-5), (
        "mismatch vs reference, max abs diff = "
        + str(float(jnp.max(jnp.abs(out - ref)))))

    print("KERNEL_OK")
</pallas_src>

<mosaic_0001>
module attributes {stable_mosaic.version = 11 : i64} {
  func.func @kernel(%arg0: i32, %arg1: memref<1x16x48xf32, #tpu.memory_space<vmem>>, %arg2: memref<3x48x128xf32, #tpu.memory_space<vmem>>, %arg3: memref<1x128xf32, #tpu.memory_space<vmem>>, %arg4: memref<3x64x128xf32, #tpu.memory_space<vmem>>, %arg5: memref<1x128xf32, #tpu.memory_space<vmem>>, %arg6: memref<1x4x64xf32, #tpu.memory_space<vmem>>, %arg7: memref<18x64xf32, #tpu.memory_space<vmem>>) attributes {dimension_semantics = [#tpu.dimension_semantics<parallel>], iteration_bounds = array<i64: 2>, scalar_prefetch = 0 : i64, scratch_operands = 1 : i64, tpu.core_type = #tpu.core_type<tc>, window_params = [{transform_indices = @transform_0, window_bounds = array<i64: 1, 16, 48>}, {pipeline_mode = #tpu.pipeline_mode<synchronous>, transform_indices = @transform_1, window_bounds = array<i64: 3, 48, 128>}, {pipeline_mode = #tpu.pipeline_mode<synchronous>, transform_indices = @transform_2, window_bounds = array<i64: 1, 128>}, {pipeline_mode = #tpu.pipeline_mode<synchronous>, transform_indices = @transform_3, window_bounds = array<i64: 3, 64, 128>}, {pipeline_mode = #tpu.pipeline_mode<synchronous>, transform_indices = @transform_4, window_bounds = array<i64: 1, 128>}, {transform_indices = @transform_5, window_bounds = array<i64: 1, 4, 64>}]} {
    %c0 = arith.constant 0 : index
    %c0_0 = arith.constant 0 : index
    %c0_1 = arith.constant 0 : index
    %0 = vector.load %arg1[%c0, %c0_0, %c0_1] : memref<1x16x48xf32, #tpu.memory_space<vmem>>, vector<1x16x48xf32>
    %1 = vector.shape_cast %0 : vector<1x16x48xf32> to vector<16x48xf32>
    %cst = arith.constant 0.000000e+00 : f32
    %2 = vector.broadcast %cst : f32 to vector<18x64xf32>
    %c0_2 = arith.constant 0 : index
    %c0_3 = arith.constant 0 : index
    %3 = vector.load %arg7[%c0_2, %c0_3] : memref<18x64xf32, #tpu.memory_space<vmem>>, vector<18x64xf32>
    tpu.vector_store %arg7[%c0_2, %c0_3], %2 {strides = array<i32>} : memref<18x64xf32, #tpu.memory_space<vmem>>, vector<18x64xf32>,
    %c1 = arith.constant 1 : index
    %c0_4 = arith.constant 0 : index
    %4 = vector.load %arg7[%c1, %c0_4] : memref<18x64xf32, #tpu.memory_space<vmem>>, vector<16x48xf32>
    tpu.vector_store %arg7[%c1, %c0_4], %1 {strides = array<i32>} : memref<18x64xf32, #tpu.memory_space<vmem>>, vector<16x48xf32>,
    %c0_5 = arith.constant 0 : index
    %c0_6 = arith.constant 0 : index
    %5 = vector.load %arg7[%c0_5, %c0_6] : memref<18x64xf32, #tpu.memory_space<vmem>>, vector<16x48xf32>
    %c0_7 = arith.constant 0 : index
    %c0_8 = arith.constant 0 : index
    %c0_9 = arith.constant 0 : index
    %6 = vector.load %arg2[%c0_7, %c0_8, %c0_9] : memref<3x48x128xf32, #tpu.memory_space<vmem>>, vector<1x48x128xf32>
    %7 = vector.shape_cast %6 : vector<1x48x128xf32> to vector<48x128xf32>
    %cst_10 = arith.constant dense<0.000000e+00> : vector<16x128xf32>
    %8 = tpu.matmul %5, %7, %cst_10 {dimension_numbers = #tpu.dot_dimension_numbers<[1], [0], [0], [1], [0, 0, 1, 1], [], []>} : vector<16x48xf32>, vector<48x128xf32>, vector<16x128xf32> -> vector<16x128xf32>
    %c1_11 = arith.constant 1 : index
    %c0_12 = arith.constant 0 : index
    %9 = vector.load %arg7[%c1_11, %c0_12] : memref<18x64xf32, #tpu.memory_space<vmem>>, vector<16x48xf32>
    %c1_13 = arith.constant 1 : index
    %c0_14 = arith.constant 0 : index
    %c0_15 = arith.constant 0 : index
    %10 = vector.load %arg2[%c1_13, %c0_14, %c0_15] : memref<3x48x128xf32, #tpu.memory_space<vmem>>, vector<1x48x128xf32>
    %11 = vector.shape_cast %10 : vector<1x48x128xf32> to vector<48x128xf32>
    %cst_16 = arith.constant dense<0.000000e+00> : vector<16x128xf32>
    %12 = tpu.matmul %9, %11, %cst_16 {dimension_numbers = #tpu.dot_dimension_numbers<[1], [0], [0], [1], [0, 0, 1, 1], [], []>} : vector<16x48xf32>, vector<48x128xf32>, vector<16x128xf32> -> vector<16x128xf32>
    %13 = arith.addf %8, %12 : vector<16x128xf32>
    %c2 = arith.constant 2 : index
    %c0_17 = arith.constant 0 : index
    %14 = vector.load %arg7[%c2, %c0_17] : memref<18x64xf32, #tpu.memory_space<vmem>>, vector<16x48xf32>
    %c2_18 = arith.constant 2 : index
    %c0_19 = arith.constant 0 : index
    %c0_20 = arith.constant 0 : index
    %15 = vector.load %arg2[%c2_18, %c0_19, %c0_20] : memref<3x48x128xf32, #tpu.memory_space<vmem>>, vector<1x48x128xf32>
    %16 = vector.shape_cast %15 : vector<1x48x128xf32> to vector<48x128xf32>
    %cst_21 = arith.constant dense<0.000000e+00> : vector<16x128xf32>
    %17 = tpu.matmul %14, %16, %cst_21 {dimension_numbers = #tpu.dot_dimension_numbers<[1], [0], [0], [1], [0, 0, 1, 1], [], []>} : vector<16x48xf32>, vector<48x128xf32>, vector<16x128xf32> -> vector<16x128xf32>
    %18 = arith.addf %13, %17 : vector<16x128xf32>
    %c0_22 = arith.constant 0 : index
    %c0_23 = arith.constant 0 : index
    %19 = vector.load %arg3[%c0_22, %c0_23] : memref<1x128xf32, #tpu.memory_space<vmem>>, vector<1x128xf32>
    %20 = vector.broadcast %19 : vector<1x128xf32> to vector<16x128xf32>
    %21 = arith.addf %18, %20 : vector<16x128xf32>
    %cst_24 = arith.constant 0.000000e+00 : f32
    %22 = vector.broadcast %cst_24 : f32 to vector<16x128xf32>
    %23 = arith.maximumf %21, %22 : vector<16x128xf32>
    %24 = vector.shape_cast %23 : vector<16x128xf32> to vector<8x2x128xf32>
    %cst_25 = arith.constant dense<0xFF800000> : vector<8x128xf32>
    %25 = vector.multi_reduction <maximumf>, %24, %cst_25 [1] : vector<8x2x128xf32> to vector<8x128xf32>
    %26 = vector.shape_cast %25 : vector<8x128xf32> to vector<8x8x16xf32>
    %27 = vector.extract_strided_slice %26 {offsets = [0, 0, 0], sizes = [8, 8, 8], strides = [1, 1, 1]} : vector<8x8x16xf32> to vector<8x8x8xf32>
    %28 = vector.extract_strided_slice %26 {offsets = [0, 0, 8], sizes = [8, 8, 8], strides = [1, 1, 1]} : vector<8x8x16xf32> to vector<8x8x8xf32>
    %29 = arith.maximumf %27, %28 : vector<8x8x8xf32>
    %30 = vector.shape_cast %29 : vector<8x8x8xf32> to vector<8x64xf32>
    %cst_26 = arith.constant 0.000000e+00 : f32
    %31 = vector.broadcast %cst_26 : f32 to vector<18x64xf32>
    %c0_27 = arith.constant 0 : index
    %c0_28 = arith.constant 0 : index
    %32 = vector.load %arg7[%c0_27, %c0_28] : memref<18x64xf32, #tpu.memory_space<vmem>>, vector<18x64xf32>
    tpu.vector_store %arg7[%c0_27, %c0_28], %31 {strides = array<i32>} : memref<18x64xf32, #tpu.memory_space<vmem>>, vector<18x64xf32>,
    %c1_29 = arith.constant 1 : index
    %c0_30 = arith.constant 0 : index
    %33 = vector.load %arg7[%c1_29, %c0_30] : memref<18x64xf32, #tpu.memory_space<vmem>>, vector<8x64xf32>
    tpu.vector_store %arg7[%c1_29, %c0_30], %30 {strides = array<i32>} : memref<18x64xf32, #tpu.memory_space<vmem>>, vector<8x64xf32>,
    %c0_31 = arith.constant 0 : index
    %c0_32 = arith.constant 0 : index
    %34 = vector.load %arg7[%c0_31, %c0_32] : memref<18x64xf32, #tpu.memory_space<vmem>>, vector<8x64xf32>
    %c0_33 = arith.constant 0 : index
    %c0_34 = arith.constant 0 : index
    %c0_35 = arith.constant 0 : index
    %35 = vector.load %arg4[%c0_33, %c0_34, %c0_35] : memref<3x64x128xf32, #tpu.memory_space<vmem>>, vector<1x64x128xf32>
    %36 = vector.shape_cast %35 : vector<1x64x128xf32> to vector<64x128xf32>
    %cst_36 = arith.constant dense<0.000000e+00> : vector<8x128xf32>
    %37 = tpu.matmul %34, %36, %cst_36 {dimension_numbers = #tpu.dot_dimension_numbers<[1], [0], [0], [1], [0, 0, 1, 1], [], []>} : vector<8x64xf32>, vector<64x128xf32>, vector<8x128xf32> -> vector<8x128xf32>
    %c1_37 = arith.constant 1 : index
    %c0_38 = arith.constant 0 : index
    %38 = vector.load %arg7[%c1_37, %c0_38] : memref<18x64xf32, #tpu.memory_space<vmem>>, vector<8x64xf32>
    %c1_39 = arith.constant 1 : index
    %c0_40 = arith.constant 0 : index
    %c0_41 = arith.constant 0 : index
    %39 = vector.load %arg4[%c1_39, %c0_40, %c0_41] : memref<3x64x128xf32, #tpu.memory_space<vmem>>, vector<1x64x128xf32>
    %40 = vector.shape_cast %39 : vector<1x64x128xf32> to vector<64x128xf32>
    %cst_42 = arith.constant dense<0.000000e+00> : vector<8x128xf32>
    %41 = tpu.matmul %38, %40, %cst_42 {dimension_numbers = #tpu.dot_dimension_numbers<[1], [0], [0], [1], [0, 0, 1, 1], [], []>} : vector<8x64xf32>, vector<64x128xf32>, vector<8x128xf32> -> vector<8x128xf32>
    %42 = arith.addf %37, %41 : vector<8x128xf32>
    %c2_43 = arith.constant 2 : index
    %c0_44 = arith.constant 0 : index
    %43 = vector.load %arg7[%c2_43, %c0_44] : memref<18x64xf32, #tpu.memory_space<vmem>>, vector<8x64xf32>
    %c2_45 = arith.constant 2 : index
    %c0_46 = arith.constant 0 : index
    %c0_47 = arith.constant 0 : index
    %44 = vector.load %arg4[%c2_45, %c0_46, %c0_47] : memref<3x64x128xf32, #tpu.memory_space<vmem>>, vector<1x64x128xf32>
    %45 = vector.shape_cast %44 : vector<1x64x128xf32> to vector<64x128xf32>
    %cst_48 = arith.constant dense<0.000000e+00> : vector<8x128xf32>
    %46 = tpu.matmul %43, %45, %cst_48 {dimension_numbers = #tpu.dot_dimension_numbers<[1], [0], [0], [1], [0, 0, 1, 1], [], []>} : vector<8x64xf32>, vector<64x128xf32>, vector<8x128xf32> -> vector<8x128xf32>
    %47 = arith.addf %42, %46 : vector<8x128xf32>
    %c0_49 = arith.constant 0 : index
    %c0_50 = arith.constant 0 : index
    %48 = vector.load %arg5[%c0_49, %c0_50] : memref<1x128xf32, #tpu.memory_space<vmem>>, vector<1x128xf32>
    %49 = vector.broadcast %48 : vector<1x128xf32> to vector<8x128xf32>
    %50 = arith.addf %47, %49 : vector<8x128xf32>
    %cst_51 = arith.constant 0.000000e+00 : f32
    %51 = vector.broadcast %cst_51 : f32 to vector<8x128xf32>
    %52 = arith.maximumf %50, %51 : vector<8x128xf32>
    %53 = vector.shape_cast %52 : vector<8x128xf32> to vector<4x2x128xf32>
    %cst_52 = arith.constant dense<0xFF800000> : vector<4x128xf32>
    %54 = vector.multi_reduction <maximumf>, %53, %cst_52 [1] : vector<4x2x128xf32> to vector<4x128xf32>
    %55 = vector.shape_cast %54 : vector<4x128xf32> to vector<4x4x32xf32>
    %56 = vector.extract_strided_slice %55 {offsets = [0, 0, 0], sizes = [4, 4, 16], strides = [1, 1, 1]} : vector<4x4x32xf32> to vector<4x4x16xf32>
    %57 = vector.extract_strided_slice %55 {offsets = [0, 0, 16], sizes = [4, 4, 16], strides = [1, 1, 1]} : vector<4x4x32xf32> to vector<4x4x16xf32>
    %58 = arith.maximumf %56, %57 : vector<4x4x16xf32>
    %59 = vector.shape_cast %58 : vector<4x4x16xf32> to vector<4x64xf32>
    %c0_53 = arith.constant 0 : index
    %c0_54 = arith.constant 0 : index
    %c0_55 = arith.constant 0 : index
    %60 = vector.load %arg6[%c0_53, %c0_54, %c0_55] : memref<1x4x64xf32, #tpu.memory_space<vmem>>, vector<1x4x64xf32>
    %61 = vector.shape_cast %60 : vector<1x4x64xf32> to vector<4x64xf32>
    %62 = vector.shape_cast %59 : vector<4x64xf32> to vector<1x4x64xf32>
    tpu.vector_store %arg6[%c0_53, %c0_54, %c0_55], %62 {strides = array<i32>} : memref<1x4x64xf32, #tpu.memory_space<vmem>>, vector<1x4x64xf32>,
    return
  }
  func.func @transform_0(%arg0: i32) -> (i32, i32, i32) {
    %c0_i32 = arith.constant 0 : i32
    %c0_i32_0 = arith.constant 0 : i32
    %c0_i32_1 = arith.constant 0 : i32
    return %arg0, %c0_i32, %c0_i32_0 : i32, i32, i32
  }
  func.func @transform_1(%arg0: i32) -> (i32, i32, i32) {
    %c0_i32 = arith.constant 0 : i32
    %c0_i32_0 = arith.constant 0 : i32
    %c0_i32_1 = arith.constant 0 : i32
    %c0_i32_2 = arith.constant 0 : i32
    return %c0_i32, %c0_i32_0, %c0_i32_1 : i32, i32, i32
  }
  func.func @transform_2(%arg0: i32) -> (i32, i32) {
    %c0_i32 = arith.constant 0 : i32
    %c0_i32_0 = arith.constant 0 : i32
    %c0_i32_1 = arith.constant 0 : i32
    return %c0_i32, %c0_i32_0 : i32, i32
  }
  func.func @transform_3(%arg0: i32) -> (i32, i32, i32) {
    %c0_i32 = arith.constant 0 : i32
    %c0_i32_0 = arith.constant 0 : i32
    %c0_i32_1 = arith.constant 0 : i32
    %c0_i32_2 = arith.constant 0 : i32
    return %c0_i32, %c0_i32_0, %c0_i32_1 : i32, i32, i32
  }
  func.func @transform_4(%arg0: i32) -> (i32, i32) {
    %c0_i32 = arith.constant 0 : i32
    %c0_i32_0 = arith.constant 0 : i32
    %c0_i32_1 = arith.constant 0 : i32
    return %c0_i32, %c0_i32_0 : i32, i32
  }
  func.func @transform_5(%arg0: i32) -> (i32, i32, i32) {
    %c0_i32 = arith.constant 0 : i32
    %c0_i32_0 = arith.constant 0 : i32
    %c0_i32_1 = arith.constant 0 : i32
    return %arg0, %c0_i32, %c0_i32_0 : i32, i32, i32
  }
}

</mosaic_0001>

<bundles_post_ra>
// kernel: tile.13
= control target key start
LH: loop header
LB: loop body
LE: loop exit
PB: predicated region body
PF: predicated region fallthrough
CT: control target
= control target key end

     0   :  { %s28_s0 = inlined_call_operand.vmem [shape: f32[8], index: 0, kind: input, shape index: {}]   ;;  %s29_s1 = inlined_call_operand.vmem [shape: f32[16,8], index: 1, kind: output, shape index: {}]  }
   0x1   :  { %v4_v0 = vld [vmem:[%s28_s0] ss:$0 sm:$0xff] }
   0x2   :  { %5 = vst [vmem:[%s29_s1] sm:$0xff] %v4_v0  ;;  %8 = vst [vmem:[%s29_s1 + $0x8] sm:$0xff] %v4_v0 }

// kernel: tile.14
= control target key start
LH: loop header
LB: loop body
LE: loop exit
PB: predicated region body
PF: predicated region fallthrough
CT: control target
= control target key end

     0   :  { %s131_s10 = smov 120   ;;  %s132_s11 = smov 104   ;;  %vm3_vm0 = vcmask 64512   ;;  %vm9_vm1 = vcmask 1048512   ;;  %vm15_vm2 = vcmask 982912   ;;  %vm21_vm3 = vcmask 917312   ;;  %s207_s0 = inlined_call_operand.vmem [shape: f32[16,8], index: 0, kind: input, shape index: {}]   ;;  %s208_s1 = inlined_call_operand.vmem [shape: f32[1,128], index: 1, kind: output, shape index: {}]  }
   0x1   :  { %v101_v0 = vld [vmem:[%s207_s0 + $0xf] sm:$0x1]   ;;  %v103_v1 = vld [vmem:[%s207_s0 + $0xd] sm:$0x1]   ;;  %v102_v2 = vld [vmem:[%s207_s0 + $0xe] sm:$0x1]  }
   0x2   :  { %7 = vrot.lane.b32.xlu0 %v101_v0, %s131_s10  ;;  %19 = vrot.lane.b32.xlu1 %v103_v1, %s132_s11  ;;  %v104_v3 = vld [vmem:[%s207_s0 + $0xc] sm:$0x1]   ;;  %s133_s16 = smov 112   ;;  %s134_s17 = smov 96   ;;  %v105_v4 = vld [vmem:[%s207_s0 + $0xb] sm:$0x1]  }
   0x3   :  { %v106_v5 = vld [vmem:[%s207_s0 + $0xa] sm:$0x1]   ;;  %v2_v6 = vld [vmem:[%s207_s0] sm:$0x1]   ;;  %s135_s24 = smov 88   ;;  %s136_s25 = smov 80  }
   0x4   :  { %4 = vst.msk [vmem:[#allocation0] sm:$0x1] %vm3_vm0, %v2_v6   ;;  %v107_v7 = vld [vmem:[%s207_s0 + $0x9] sm:$0x1]   ;;  %v108_v8 = vld [vmem:[%s207_s0 + $0x8] sm:$0x1]  }
   0x5   :  { %s137_s30 = smov 72   ;;  %s138_s2 = smov 64   ;;  %v109_v9 = vld [vmem:[%s207_s0 + $0x7] sm:$0x1]   ;;  %v110_v10 = vld [vmem:[%s207_s0 + $0x6] sm:$0x1]  }
   0x6   :  { %13 = vrot.lane.b32.xlu0 %v102_v2, %s133_s16  ;;  %25 = vrot.lane.b32.xlu1 %v104_v3, %s134_s17  ;;  %s139_s7 = smov 56   ;;  %s140_s8 = smov 48   ;;  %v111_v11 = vld [vmem:[%s207_s0 + $0x5] sm:$0x1]   ;;  %v112_v12 = vld [vmem:[%s207_s0 + $0x4] sm:$0x1]  }
   0x7   :  { %s141_s13 = smov 40   ;;  %s142_s14 = smov 32   ;;  %v113_v13 = vld [vmem:[%s207_s0 + $0x3] sm:$0x1]   ;;  %v114_v14 = vld [vmem:[%s207_s0 + $0x2] sm:$0x1]  }
   0x8   :  { %s143_s19 = smov 24   ;;  %s144_s20 = smov 16   ;;  %v115_v15 = vld [vmem:[%s207_s0 + $0x1] sm:$0x1]   ;;  %vm27_vm4 = vcmask 851712   ;;  %vm33_vm5 = vcmask 786112  }
   0x9   :  { %s145_s0 = smov 8   ;;  %vm39_vm6 = vcmask 720512   ;;  %vm45_vm7 = vcmask 654912   ;;  %vm51_vm8 = vcmask 589312   ;;  %vm57_vm9 = vcmask 523712  }
   0xa   :  { %31 = vrot.lane.b32.xlu0 %v105_v4, %s135_s24  ;;  %37 = vrot.lane.b32.xlu1 %v106_v5, %s136_s25  ;;  %vm63_vm10 = vcmask 458112   ;;  %vm69_vm11 = vcmask 392512   ;;  %vm75_vm12 = vcmask 326912   ;;  %vm81_vm13 = vcmask 261312  }
   0xb   :  { %vm87_vm14 = vcmask 195712   ;;  %vm93_vm15 = vcmask 130112  }
   0xe   :  { %43 = vrot.lane.b32.xlu0 %v107_v7, %s137_s30  ;;  %49 = vrot.lane.b32.xlu1 %v108_v8, %s138_s2 }
  0x12   :  { %55 = vrot.lane.b32.xlu0 %v109_v9, %s139_s7  ;;  %61 = vrot.lane.b32.xlu1 %v110_v10, %s140_s8 }
  0x16   :  { %67 = vrot.lane.b32.xlu0 %v111_v11, %s141_s13  ;;  %73 = vrot.lane.b32.xlu1 %v112_v12, %s142_s14 }
  0x1a   :  { %79 = vrot.lane.b32.xlu0 %v113_v13, %s143_s19  ;;  %85 = vrot.lane.b32.xlu1 %v114_v14, %s144_s20 }
  0x1e   :  { %91 = vrot.lane.b32.xlu0 %v115_v15, %s145_s0 }
  0x74   :  { %v8_v16 = vpop.permute.xlu0 %7   ;;  %v20_v17 = vpop.permute.xlu1 %19  }
  0x75   :  { %10 = vst.msk [vmem:[#allocation0] sm:$0x1] %vm9_vm1, %v8_v16  }
  0x78   :  { %v14_v18 = vpop.permute.xlu0 %13   ;;  %v26_v19 = vpop.permute.xlu1 %25  }
  0x79   :  { %16 = vst.msk [vmem:[#allocation0] sm:$0x1] %vm15_vm2, %v14_v18  }
  0x7a   :  { %22 = vst.msk [vmem:[#allocation0] sm:$0x1] %vm21_vm3, %v20_v17  }
  0x7b   :  { %28 = vst.msk [vmem:[#allocation0] sm:$0x1] %vm27_vm4, %v26_v19  }
  0x7c   :  { %v32_v20 = vpop.permute.xlu0 %31   ;;  %v38_v21 = vpop.permute.xlu1 %37  }
  0x7d   :  { %34 = vst.msk [vmem:[#allocation0] sm:$0x1] %vm33_vm5, %v32_v20  }
  0x7e   :  { %40 = vst.msk [vmem:[#allocation0] sm:$0x1] %vm39_vm6, %v38_v21  }
  0x80   :  { %v44_v22 = vpop.permute.xlu0 %43   ;;  %v50_v23 = vpop.permute.xlu1 %49  }
  0x81   :  { %46 = vst.msk [vmem:[#allocation0] sm:$0x1] %vm45_vm7, %v44_v22  }
  0x82   :  { %52 = vst.msk [vmem:[#allocation0] sm:$0x1] %vm51_vm8, %v50_v23  }
  0x84   :  { %v56_v24 = vpop.permute.xlu0 %55   ;;  %v62_v25 = vpop.permute.xlu1 %61  }
  0x85   :  { %58 = vst.msk [vmem:[#allocation0] sm:$0x1] %vm57_vm9, %v56_v24  }
  0x86   :  { %64 = vst.msk [vmem:[#allocation0] sm:$0x1] %vm63_vm10, %v62_v25  }
  0x88   :  { %v68_v26 = vpop.permute.xlu0 %67   ;;  %v74_v27 = vpop.permute.xlu1 %73  }
  0x89   :  { %70 = vst.msk [vmem:[#allocation0] sm:$0x1] %vm69_vm11, %v68_v26  }
  0x8a   :  { %76 = vst.msk [vmem:[#allocation0] sm:$0x1] %vm75_vm12, %v74_v27  }
  0x8c   :  { %v80_v28 = vpop.permute.xlu0 %79   ;;  %v86_v29 = vpop.permute.xlu1 %85  }
  0x8d   :  { %82 = vst.msk [vmem:[#allocation0] sm:$0x1] %vm81_vm13, %v80_v28  }
  0x8e   :  { %88 = vst.msk [vmem:[#allocation0] sm:$0x1] %vm87_vm14, %v86_v29  }
  0x90   :  { %v92_v30 = vpop.permute.xlu0 %91  }
  0x91   :  { %94 = vst.msk [vmem:[#allocation0] sm:$0x1] %vm93_vm15, %v92_v30  }
  0x98   :  { %v98_v31 = vld [vmem:[#allocation0] sm:$0x1] }
  0x99   :  { %100 = vst [vmem:[%s208_s1] sm:$0x1] %v98_v31 }

// kernel: tile.18
= control target key start
LH: loop header
LB: loop body
LE: loop exit
PB: predicated region body
PF: predicated region fallthrough
CT: control target
= control target key end

     0   :  { %s22_s0 = inlined_call_operand.vmem [shape: f32[16], index: 0, kind: input, shape index: {}]   ;;  %s23_s1 = inlined_call_operand.vmem [shape: f32[8,16], index: 1, kind: output, shape index: {}]  }
   0x1   :  { %v4_v0 = vld [vmem:[%s22_s0] ss:$0 sm:$0xff] }
   0x2   :  { %5 = vst [vmem:[%s23_s1] sm:$0xff] %v4_v0 }

// kernel: tile.19
= control target key start
LH: loop header
LB: loop body
LE: loop exit
PB: predicated region body
PF: predicated region fallthrough
CT: control target
= control target key end

     0   :  { %s67_s10 = smov 112   ;;  %s68_s11 = smov 80   ;;  %vm3_vm0 = vcmask 130048   ;;  %vm9_vm1 = vcmask 1048448   ;;  %vm15_vm2 = vcmask 917248   ;;  %vm21_vm3 = vcmask 786048   ;;  %s111_s0 = inlined_call_operand.vmem [shape: f32[8,16], index: 0, kind: input, shape index: {}]   ;;  %s112_s1 = inlined_call_operand.vmem [shape: f32[1,128], index: 1, kind: output, shape index: {}]  }
   0x1   :  { %v53_v0 = vld [vmem:[%s111_s0 + $0x7] sm:$0x1]   ;;  %v55_v1 = vld [vmem:[%s111_s0 + $0x5] sm:$0x1]   ;;  %v54_v2 = vld [vmem:[%s111_s0 + $0x6] sm:$0x1]  }
   0x2   :  { %7 = vrot.lane.b32.xlu0 %v53_v0, %s67_s10  ;;  %19 = vrot.lane.b32.xlu1 %v55_v1, %s68_s11  ;;  %v56_v3 = vld [vmem:[%s111_s0 + $0x4] sm:$0x1]   ;;  %v2_v4 = vld [vmem:[%s111_s0] sm:$0x1]   ;;  %s69_s18 = smov 96   ;;  %s70_s19 = smov 64  }
   0x3   :  { %4 = vst.msk [vmem:[#allocation0] sm:$0x1] %vm3_vm0, %v2_v4   ;;  %v57_v5 = vld [vmem:[%s111_s0 + $0x3] sm:$0x1]   ;;  %v58_v6 = vld [vmem:[%s111_s0 + $0x2] sm:$0x1]  }
   0x4   :  { %s71_s24 = smov 48   ;;  %s72_s25 = smov 32   ;;  %v59_v7 = vld [vmem:[%s111_s0 + $0x1] sm:$0x1]   ;;  %vm27_vm4 = vcmask 654848   ;;  %vm33_vm5 = vcmask 523648  }
   0x5   :  { %s73_s0 = smov 16   ;;  %vm39_vm6 = vcmask 392448   ;;  %vm45_vm7 = vcmask 261248  }
   0x6   :  { %13 = vrot.lane.b32.xlu0 %v54_v2, %s69_s18  ;;  %25 = vrot.lane.b32.xlu1 %v56_v3, %s70_s19 }
   0xa   :  { %31 = vrot.lane.b32.xlu0 %v57_v5, %s71_s24  ;;  %37 = vrot.lane.b32.xlu1 %v58_v6, %s72_s25 }
   0xe   :  { %43 = vrot.lane.b32.xlu0 %v59_v7, %s73_s0 }
  0x74   :  { %v8_v8 = vpop.permute.xlu0 %7   ;;  %v20_v9 = vpop.permute.xlu1 %19  }
  0x75   :  { %10 = vst.msk [vmem:[#allocation0] sm:$0x1] %vm9_vm1, %v8_v8  }
  0x78   :  { %v14_v10 = vpop.permute.xlu0 %13   ;;  %v26_v11 = vpop.permute.xlu1 %25  }
  0x79   :  { %16 = vst.msk [vmem:[#allocation0] sm:$0x1] %vm15_vm2, %v14_v10  }
  0x7a   :  { %22 = vst.msk [vmem:[#allocation0] sm:$0x1] %vm21_vm3, %v20_v9  }
  0x7b   :  { %28 = vst.msk [vmem:[#allocation0] sm:$0x1] %vm27_vm4, %v26_v11  }
  0x7c   :  { %v32_v12 = vpop.permute.xlu0 %31   ;;  %v38_v13 = vpop.permute.xlu1 %37  }
  0x7d   :  { %34 = vst.msk [vmem:[#allocation0] sm:$0x1] %vm33_vm5, %v32_v12  }
  0x7e   :  { %40 = vst.msk [vmem:[#allocation0] sm:$0x1] %vm39_vm6, %v38_v13  }
  0x80   :  { %v44_v14 = vpop.permute.xlu0 %43  }
  0x81   :  { %46 = vst.msk [vmem:[#allocation0] sm:$0x1] %vm45_vm7, %v44_v14  }
  0x88   :  { %v50_v15 = vld [vmem:[#allocation0] sm:$0x1] }
  0x89   :  { %52 = vst [vmem:[%s112_s1] sm:$0x1] %v50_v15 }

// kernel: vgg_forward.1
= control target key start
LH: loop header
LB: loop body
LE: loop exit
PB: predicated region body
PF: predicated region fallthrough
CT: control target
= control target key end

     0   :  { %s2101_s18 = smov 0   ;;  %s2673_s0 = inlined_call_operand.vmem [shape: f32[2,16,48], index: 0, kind: input, shape index: {}]   ;;  %s2674_s1 = inlined_call_operand.vmem [shape: f32[3,48,128], index: 1, kind: input, shape index: {}]   ;;  %s2675_s2 = inlined_call_operand.vmem [shape: f32[1,128], index: 2, kind: input, shape index: {}]   ;;  %s2676_s3 = inlined_call_operand.vmem [shape: f32[3,64,128], index: 3, kind: input, shape index: {}]   ;;  %s2677_s4 = inlined_call_operand.vmem [shape: f32[1,128], index: 4, kind: input, shape index: {}]   ;;  %s2678_s5 = inlined_call_operand.vmem [shape: f32[2,4,64], index: 5, kind: output, shape index: {}]  }
   0x1 LB: > { %s1742_s19 = sadd.s32 4294967295, %s2052_s18   ;;  %p1746_p0 = scmp.ge.s32.totalorder %s2052_s18, 1  ;;  %s2052_s18 = sphi %s2101_s18, %s15_s18  }
   0x2   : > { %p187_p1 = scmp.lt.s32.totalorder %s2052_s18, 3 }
   0x4   : > { %p188_p2 = pnand %p1746_p0, %p187_p1 }
   0x5   : > { %v1750_v0 = vld [vmem:[%s2674_s1 + $0x30] sm:$0xff] (!%p188_p2)  ;;  %v1751_v1 = vld [vmem:[%s2674_s1 + $0x38] sm:$0xff] (!%p188_p2)  ;;  %v1752_v2 = vld [vmem:[%s2674_s1 + $0x40] sm:$0xff] (!%p188_p2)  ;;  %p214_p3 = scmp.lt.s32.totalorder (!%p188_p2), %s1742_s19, 1  ;;  %vm225_vm0 = vcmask (!%p188_p2), 523264   ;;  %v2054_v5 = vmov (!%p188_p2), 0.0   ;;  %v521_v38 = vlaneseq (!%p188_p2) }
   0x6   : > { %191 = sbr.rel (%p188_p2) target bundleno = 1459 (0x5b3), region = 40  ;;  %v1945_v3 = vpack.c.bf16 (!%p188_p2), %v1751_v1, %v1750_v0  ;;  %v1753_v4 = vld [vmem:[%s2674_s1 + $0x48] sm:$0xff] (!%p188_p2)  ;;  %226 = vst.msk [vmem:[#allocation2] sm:$0xff] (!%p188_p2), %vm225_vm0, %v2054_v5  ;;  %227 = vst.msk [vmem:[#allocation2 + $0x8] sm:$0xff] (!%p188_p2), %vm225_vm0, %v2054_v5  ;;  %vm228_vm1 = vcmask (!%p188_p2), 517120   ;;  %v1754_v7 = vld [vmem:[%s2674_s1 + $0x50] sm:$0xff] (!%p188_p2) }
   0x7   : > { %v1949_v6 = vpack.c.bf16 (!%p188_p2), %v1753_v4, %v1752_v2  ;;  %v1755_v8 = vld [vmem:[%s2674_s1 + $0x58] sm:$0xff] (!%p188_p2)  ;;  %229 = vst.msk [vmem:[#allocation2 + $0x10] sm:$0x3] (!%p188_p2), %vm228_vm1, %v2054_v5  ;;  %vm230_vm2 = vcmask (!%p188_p2), 392192   ;;  %v235_v10 = vld [vmem:[%s2674_s1] sm:$0xff] (!%p188_p2)  ;;  %v236_v12 = vld [vmem:[%s2674_s1 + $0x8] sm:$0xff] (!%p188_p2) }
   0x8   : > { %1946 = vmatprep.subr.bf16.mxu0 (!%p188_p2), %v1945_v3  ;;  %v1953_v9 = vpack.c.bf16 (!%p188_p2), %v1755_v8, %v1754_v7  ;;  %v1957_v14 = vpack.c.bf16 (!%p188_p2), %v236_v12, %v235_v10  ;;  %v237_v15 = vld [vmem:[%s2674_s1 + $0x10] sm:$0xff] (!%p188_p2)  ;;  %v238_v16 = vld [vmem:[%s2674_s1 + $0x18] sm:$0xff] (!%p188_p2)  ;;  %v239_v17 = vld [vmem:[%s2674_s1 + $0x20] sm:$0xff] (!%p188_p2)  ;;  %v2055_v36 = vmov (!%p188_p2), 1983009808   ;;  %v2189_v40 = vshrl.u32 (!%p188_p2), %v521_v38, 7 }
   0x9   : > { %1948 = vmatpush3.bf16.msra.mxu0 (!%p188_p2), %v1945_v3  ;;  %v240_v18 = vld [vmem:[%s2674_s1 + $0x28] sm:$0xff] (!%p188_p2)  ;;  %v1961_v21 = vpack.c.bf16 (!%p188_p2), %v238_v16, %v237_v15  ;;  %v1760_v27 = vld [vmem:[%s2674_s1 + $0x60] sm:$0xff] (!%p188_p2)  ;;  %v1762_v30 = vld [vmem:[%s2674_s1 + $0x70] sm:$0xff] (!%p188_p2)  ;;  %v519_v37 = vunpack.c.l.s4 (!%p188_p2), %v2055_v36  ;;  %vm559_vm3 = vcmask (!%p188_p2), 1041408   ;;  %s2056_s14 = smov (!%p188_p2), 96   ;;  %s2057_s15 = smov (!%p188_p2), 112  }
   0xa   : > { %1950 = vmatprep.subr.bf16.mxu0 (!%p188_p2), %v1949_v6  ;;  %v1965_v26 = vpack.c.bf16 (!%p188_p2), %v240_v18, %v239_v17  ;;  %v1761_v28 = vld [vmem:[%s2674_s1 + $0x68] sm:$0xff] (!%p188_p2)  ;;  %v1763_v31 = vld [vmem:[%s2674_s1 + $0x78] sm:$0xff] (!%p188_p2)  ;;  %v1764_v33 = vld [vmem:[%s2674_s1 + $0x80] sm:$0xff] (!%p188_p2)  ;;  %s2058_s16 = smov (!%p188_p2), 64   ;;  %s2059_s17 = smov (!%p188_p2), 80   ;;  %vm737_vm4 = vcmask (!%p188_p2), 1041409  }
   0xb   : > { %v1969_v29 = vpack.c.bf16 (!%p188_p2), %v1761_v28, %v1760_v27  ;;  %v1973_v32 = vpack.c.bf16 (!%p188_p2), %v1763_v31, %v1762_v30  ;;  %v1765_v34 = vld [vmem:[%s2674_s1 + $0x88] sm:$0xff] (!%p188_p2)  ;;  %v520_v39 = vunpack.c.0.s8 (!%p188_p2), %v519_v37  ;;  %v1768_v41 = vld [vmem:[%s2675_s2] ss:$0 sm:$0xff] (!%p188_p2)  ;;  %vm740_vm5 = vcmask (!%p188_p2), 1042434   ;;  %s2060_s20 = smov (!%p188_p2), 32   ;;  %s2061_s21 = smov (!%p188_p2), 48  }
   0xc   : > { %v1977_v35 = vpack.c.bf16 (!%p188_p2), %v1765_v34, %v1764_v33  ;;  %vm743_vm6 = vcmask (!%p188_p2), 1043459   ;;  %vm746_vm7 = vcmask (!%p188_p2), 1044484   ;;  %vm749_vm8 = vcmask (!%p188_p2), 1045509   ;;  %s2062_s22 = smov (!%p188_p2), 16   ;;  %s2064_s23 = smov (!%p188_p2), 120  }
   0xd   : > { %s2680_s19 = smov (!%p214_p3, %s1742_s19), 1  ;;  %1952 = vmatpush3.bf16.msra.mxu0 %v1949_v6  ;;  %v2195_v44 = vsub.s32 %v520_v39, %v2189_v40  ;;  %vm752_vm9 = vcmask 1046534   ;;  %vm755_vm10 = vcmask 1047559   ;;  %s2066_s11 = smov 8   ;;  %vm2067_vm11 = vmmov 0  }
   0xe   : > { %s1791_s7 = sshll.u32 %s2680_s19, 4  ;;  %1954 = vmatprep.subr.bf16.mxu0 %v1953_v9  ;;  %1904 = vmatprep.mubr.msk.f32.mxu1 %vm2067_vm11, %v2054_v5  ;;  %s2068_s24 = smov 24   ;;  %vm1203_vm12 = vcmask 64512   ;;  %vm1205_vm13 = vcmask 130048   ;;  %vm1207_vm14 = vcmask 195584   ;;  %vm1209_vm15 = vcmask 261120  }
   0xf   : > { %s218_s10 = scalar_lea.vmem %s2673_s0, %s1791_s7  ;;  %s2069_s25 = smov 40  }
  0x10   : > { %v223_v11 = vld [vmem:[%s218_s10] sm:$0xff]  ;;  %v224_v13 = vld [vmem:[%s218_s10 + $0x8] sm:$0xff]  ;;  %s2070_s26 = smov 56  }
  0x11   : > { %231 = vst.msk [vmem:[#allocation2 + $0x1] sm:$0xff] %vm230_vm2, %v223_v11  ;;  %232 = vst.msk [vmem:[#allocation2 + $0x9] sm:$0xff] %vm230_vm2, %v224_v13  ;;  %1956 = vmatpush3.bf16.msra.mxu0 %v1953_v9 }
  0x12   : > { %1958 = vmatprep.subr.bf16.mxu0 %v1957_v14 }
  0x18   : > { %v241_v19 = vld [vmem:[#allocation2 + $0x1] sm:$0xff]  ;;  %v242_v20 = vld [vmem:[#allocation2 + $0x9] sm:$0xff] }
  0x19   : > { %v233_v22 = vld [vmem:[#allocation2] sm:$0xff]  ;;  %1855 = vmatprep.mubr.msk.f32.mxu0 %vm230_vm2, %v241_v19  ;;  %v234_v23 = vld [vmem:[#allocation2 + $0x8] sm:$0xff] }
  0x1a   : > { %v412_v24 = vld [vmem:[#allocation2 + $0x2] sm:$0xff]  ;;  %v413_v25 = vld [vmem:[#allocation2 + $0xa] sm:$0xff]  ;;  %1856 = vmatmul.mubr.msk.f32.vlgmr.msra.gmra.mrb[0].mxu0 %vm230_vm2, %v242_v20 }
  0x1b   : > { %1216 = vst.msk [vmem:[#allocation2] sm:$0xff] %vm225_vm0, %v2054_v5  ;;  %1217 = vst.msk [vmem:[#allocation2 + $0x8] sm:$0xff] %vm225_vm0, %v2054_v5  ;;  %1960 = vmatpush3.bf16.msra.mxu0 %v1957_v14  ;;  %1870 = vmatprep.mubr.msk.f32.mxu0 %vm230_vm2, %v233_v22 }
  0x1c   : > { %1218 = vst.msk [vmem:[#allocation2 + $0x10] sm:$0x3] %vm228_vm1, %v2054_v5  ;;  %1962 = vmatprep.subr.bf16.mxu0 %v1961_v21  ;;  %vm1211_vm1 = vcmask 326656  }
  0x1f   : > { %1964 = vmatpush3.bf16.msra.mxu0 %v1961_v21 }
  0x20   : > { %1966 = vmatprep.subr.bf16.mxu0 %v1965_v26 }
  0x23   : > { %1968 = vmatpush3.bf16.msra.mxu0 %v1965_v26 }
  0x24   : > { %1970 = vmatprep.subr.bf16.mxu0 %v1969_v29 }
  0x26   : > { %1871 = vmatmul.mubr.msk.f32.vlgmr.msra.gmra.mrb[0].mxu0 %vm230_vm2, %v234_v23 }
  0x27   : > { %1972 = vmatpush3.bf16.msra.mxu0 %v1969_v29  ;;  %1885 = vmatprep.mubr.msk.f32.mxu0 %vm230_vm2, %v412_v24 }
  0x28   : > { %1974 = vmatprep.subr.bf16.mxu0 %v1973_v32 }
  0x2b   : > { %1976 = vmatpush3.bf16.msra.mxu0 %v1973_v32 }
  0x2c   : > { %1978 = vmatprep.subr.bf16.mxu0 %v1977_v35 }
  0x2f   : > { %1980 = vmatpush3.bf16.msra.mxu0 %v1977_v35 }
  0x32   : > { %1886 = vmatmul.mubr.msk.f32.vlgmr.msra.gmra.mrb[0].mxu0 %vm230_vm2, %v413_v25 }
 0x105   : > { %v1887_v42 = vpop.f32.mrb[0].mxu0 }
 0x106   : > { %v512_v43 = vadd.f32 %v1887_v42, %v1768_v41  ;;  %v493_v45 = vpop.f32.mrb[1].mxu0 }
 0x107   : > { %v511_v46 = vadd.f32 %v1768_v41, %v493_v45 }
 0x108   : > { %v514_v47 = vmax.f32 %v512_v43, 0.0 }
 0x109   : > { %v513_v48 = vmax.f32 %v511_v46, 0.0 }
 0x10a   : > { %v541_v49 = vrot.slane %v514_v47, %v2195_v44  ;;  %v534_v11 = vcombine.high %v514_v47, %v514_v47 }
 0x10b   : > { %v517_v50 = vcombine.high %v513_v48, %v513_v48  ;;  %v524_v51 = vrot.slane %v513_v48, %v2195_v44 }
 0x10c   : > { %v549_v52 = vcombine.high %v541_v49, %v541_v49  ;;  %v588_v53 = vsel %vm559_vm3, %v541_v49, -inf  ;;  %v2207_v22 = vrot.slane %v534_v11, %v2195_v44 }
 0x10d   : > { %v589_v54 = vrot.slane %v588_v53, 4  ;;  %v531_v55 = vrot.slane %v517_v50, %v2195_v44  ;;  %v532_v56 = vcombine.high %v524_v51, %v524_v51  ;;  %v560_v57 = vsel %vm559_vm3, %v524_v51, -inf }
 0x10e   : > { %v595_v58 = vsel %vm559_vm3, %v549_v52, -inf  ;;  %v561_v59 = vrot.slane %v560_v57, 4  ;;  %v602_v31 = vsel %vm559_vm3, %v2207_v22, -inf }
 0x10f   : > { %v590_v60 = vmax.f32 %v588_v53, %v589_v54  ;;  %v596_v61 = vrot.slane %v595_v58, 4  ;;  %v533_v62 = vcombine.high %v531_v55, %v531_v55  ;;  %v567_v0 = vsel %vm559_vm3, %v532_v56, -inf }
 0x110   : > { %v562_v63 = vmax.f32 %v560_v57, %v561_v59  ;;  %v574_v1 = vsel %vm559_vm3, %v531_v55, -inf  ;;  %v568_v6 = vrot.slane %v567_v0, 4  ;;  %v603_v41 = vrot.slane %v602_v31, 4 }
 0x111   : > { %v591_v2 = vrot.slane %v590_v60, 2  ;;  %v597_v3 = vmax.f32 %v595_v58, %v596_v61  ;;  %v575_v7 = vrot.slane %v574_v1, 4  ;;  %v581_v8 = vsel %vm559_vm3, %v533_v62, -inf }
 0x112   : > { %v563_v4 = vrot.slane %v562_v63, 2  ;;  %v569_v12 = vmax.f32 %v567_v0, %v568_v6  ;;  %v582_v14 = vrot.slane %v581_v8, 4  ;;  %v604_v49 = vmax.f32 %v602_v31, %v603_v41 }
 0x113   : > { %v592_v9 = vmax.f32 %v590_v60, %v591_v2  ;;  %v598_v10 = vrot.slane %v597_v3, 2  ;;  %v576_v13 = vmax.f32 %v574_v1, %v575_v7  ;;  %v550_v56 = vcombine.high %v2207_v22, %v2207_v22 }
 0x114   : > { %v564_v16 = vmax.f32 %v562_v63, %v563_v4  ;;  %v570_v18 = vrot.slane %v569_v12, 2  ;;  %v583_v20 = vmax.f32 %v581_v8, %v582_v14  ;;  %v605_v52 = vrot.slane %v604_v49, 2 }
 0x115   : > { %v593_v15 = vrot.slane %v592_v9, 1  ;;  %v599_v17 = vmax.f32 %v597_v3, %v598_v10  ;;  %v577_v19 = vrot.slane %v576_v13, 2  ;;  %v609_v57 = vsel %vm559_vm3, %v550_v56, -inf }
 0x116   : > { %v571_v23 = vmax.f32 %v569_v12, %v570_v18  ;;  %v584_v25 = vrot.slane %v583_v20, 2  ;;  %v565_v26 = vrot.slane %v564_v16, 1  ;;  %v606_v53 = vmax.f32 %v604_v49, %v605_v52 }
 0x117   : > { %v594_v21 = vmax.f32 %v592_v9, %v593_v15  ;;  %v578_v24 = vmax.f32 %v576_v13, %v577_v19  ;;  %v600_v27 = vrot.slane %v599_v17, 1  ;;  %v610_v58 = vrot.slane %v609_v57, 4 }
 0x118   : > { %v572_v28 = vrot.slane %v571_v23, 1  ;;  %v585_v30 = vmax.f32 %v583_v20, %v584_v25  ;;  %v566_v35 = vmax.f32 %v564_v16, %v565_v26  ;;  %v607_v54 = vrot.slane %v606_v53, 1 }
 0x119   : > { %648 = vrot.lane.b32.xlu1 %v594_v21, %s2056_s14  ;;  %632 = vrot.lane.b32.xlu0 %v594_v21, %s2057_s15  ;;  %v579_v29 = vrot.slane %v578_v24, 1  ;;  %v601_v36 = vmax.f32 %v599_v17, %v600_v27  ;;  %v745_v45 = vrot.slane %v594_v21, 4  ;;  %v611_v59 = vmax.f32 %v609_v57, %v610_v58 }
 0x11a   : > { %v2213_v32 = vmax.f32 %v571_v23, %v572_v28  ;;  %v586_v34 = vrot.slane %v585_v30, 1  ;;  %v2241_v55 = vmax.f32 %v606_v53, %v607_v54 }
 0x11b   : > { %v2215_v33 = vmax.f32 %v578_v24, %v579_v29  ;;  %v748_v47 = vrot.slane %v601_v36, 3  ;;  %v612_v60 = vrot.slane %v611_v59, 2 }
 0x11c   : > { %v2219_v37 = vmax.f32 %v585_v30, %v586_v34  ;;  %v736_v38 = vrot.slane %v2213_v32, 7  ;;  %v751_v49 = vrot.slane %v2241_v55, 2 }
 0x11d   : > { %680 = vrot.lane.b32.xlu1 %v594_v21, %s2058_s16  ;;  %664 = vrot.lane.b32.xlu0 %v594_v21, %s2059_s17  ;;  %v739_v39 = vrot.slane %v2215_v33, 6  ;;  %v613_v61 = vmax.f32 %v611_v59, %v612_v60 }
 0x11e   : > { %v738_v42 = vsel %vm737_vm4, %v736_v38, %v566_v35  ;;  %v742_v43 = vrot.slane %v2219_v37, 5 }
 0x11f   : > { %v741_v46 = vsel %vm740_vm5, %v739_v39, %v738_v42  ;;  %v614_v62 = vrot.slane %v613_v61, 1 }
 0x120   : > { %v744_v48 = vsel %vm743_vm6, %v742_v43, %v741_v46 }
 0x121   : > { %712 = vrot.lane.b32.xlu1 %v594_v21, %s2060_s20  ;;  %696 = vrot.lane.b32.xlu0 %v594_v21, %s2061_s21  ;;  %v747_v50 = vsel %vm746_vm7, %v745_v45, %v744_v48  ;;  %v2279_v63 = vmax.f32 %v613_v61, %v614_v62 }
 0x122   : > { %v2231_v51 = vsel %vm749_vm8, %v748_v47, %v747_v50 }
 0x123   : > { %v753_v56 = vsel %vm752_vm9, %v751_v49, %v2231_v51  ;;  %v754_v61 = vrot.slane %v2279_v63, 1 }
 0x125   : > { %728 = vrot.lane.b32.xlu0 %v594_v21, %s2062_s22  ;;  %634 = vrot.lane.b32.xlu1 %v601_v36, %s2057_s15 }
 0x129   : > { %666 = vrot.lane.b32.xlu1 %v601_v36, %s2059_s17  ;;  %624 = vrot.lane.b32.xlu0 %v566_v35, %s2057_s15 }
 0x12d   : > { %698 = vrot.lane.b32.xlu1 %v601_v36, %s2061_s21  ;;  %640 = vrot.lane.b32.xlu0 %v566_v35, %s2056_s14 }
 0x131   : > { %730 = vrot.lane.b32.xlu1 %v601_v36, %s2062_s22  ;;  %656 = vrot.lane.b32.xlu0 %v566_v35, %s2059_s17 }
 0x135   : > { %652 = vrot.lane.b32.xlu1 %v2241_v55, %s2056_s14  ;;  %672 = vrot.lane.b32.xlu0 %v566_v35, %s2058_s16 }
 0x139   : > { %684 = vrot.lane.b32.xlu1 %v2241_v55, %s2058_s16  ;;  %688 = vrot.lane.b32.xlu0 %v566_v35, %s2061_s21 }
 0x13d   : > { %716 = vrot.lane.b32.xlu1 %v2241_v55, %s2060_s20  ;;  %704 = vrot.lane.b32.xlu0 %v566_v35, %s2060_s20 }
 0x141   : > { %720 = vrot.lane.b32.xlu0 %v566_v35, %s2062_s22  ;;  %658 = vrot.lane.b32.xlu1 %v2213_v32, %s2059_s17 }
 0x145   : > { %650 = vrot.lane.b32.xlu0 %v601_v36, %s2056_s14  ;;  %674 = vrot.lane.b32.xlu1 %v2213_v32, %s2058_s16 }
 0x149   : > { %682 = vrot.lane.b32.xlu0 %v601_v36, %s2058_s16  ;;  %706 = vrot.lane.b32.xlu1 %v2213_v32, %s2060_s20 }
 0x14d   : > { %714 = vrot.lane.b32.xlu0 %v601_v36, %s2060_s20  ;;  %628 = vrot.lane.b32.xlu1 %v2215_v33, %s2057_s15 }
 0x151   : > { %636 = vrot.lane.b32.xlu0 %v2241_v55, %s2057_s15  ;;  %660 = vrot.lane.b32.xlu1 %v2215_v33, %s2059_s17 }
 0x155   : > { %668 = vrot.lane.b32.xlu0 %v2241_v55, %s2059_s17  ;;  %692 = vrot.lane.b32.xlu1 %v2215_v33, %s2061_s21 }
 0x159   : > { %700 = vrot.lane.b32.xlu0 %v2241_v55, %s2061_s21  ;;  %724 = vrot.lane.b32.xlu1 %v2215_v33, %s2062_s22 }
 0x15d   : > { %732 = vrot.lane.b32.xlu0 %v2241_v55, %s2062_s22  ;;  %638 = vrot.lane.b32.xlu1 %v2279_v63, %s2057_s15 }
 0x161   : > { %626 = vrot.lane.b32.xlu0 %v2213_v32, %s2057_s15  ;;  %670 = vrot.lane.b32.xlu1 %v2279_v63, %s2059_s17 }
 0x165   : > { %642 = vrot.lane.b32.xlu0 %v2213_v32, %s2056_s14  ;;  %702 = vrot.lane.b32.xlu1 %v2279_v63, %s2061_s21 }
 0x169   : > { %690 = vrot.lane.b32.xlu0 %v2213_v32, %s2061_s21  ;;  %630 = vrot.lane.b32.xlu1 %v2219_v37, %s2057_s15 }
 0x16d   : > { %722 = vrot.lane.b32.xlu0 %v2213_v32, %s2062_s22  ;;  %646 = vrot.lane.b32.xlu1 %v2219_v37, %s2056_s14 }
 0x171   : > { %644 = vrot.lane.b32.xlu0 %v2215_v33, %s2056_s14  ;;  %662 = vrot.lane.b32.xlu1 %v2219_v37, %s2059_s17 }
 0x175   : > { %676 = vrot.lane.b32.xlu0 %v2215_v33, %s2058_s16  ;;  %678 = vrot.lane.b32.xlu1 %v2219_v37, %s2058_s16 }
 0x179   : > { %708 = vrot.lane.b32.xlu0 %v2215_v33, %s2060_s20  ;;  %694 = vrot.lane.b32.xlu1 %v2219_v37, %s2061_s21 }
 0x17d   : > { %654 = vrot.lane.b32.xlu0 %v2279_v63, %s2056_s14  ;;  %710 = vrot.lane.b32.xlu1 %v2219_v37, %s2060_s20 }
 0x181   : > { %686 = vrot.lane.b32.xlu0 %v2279_v63, %s2058_s16  ;;  %726 = vrot.lane.b32.xlu1 %v2219_v37, %s2062_s22 }
 0x185   : > { %718 = vrot.lane.b32.xlu0 %v2279_v63, %s2060_s20  ;;  %734 = vrot.lane.b32.xlu1 %v2279_v63, %s2062_s22 }
 0x18b   : > { %v2325_v0 = vpop.permute.xlu1 %648  ;;  %v633_v1 = vpop.permute.xlu0 %632 }
 0x18c   : > { %v763_v50 = vrot.slane %v633_v1, 4  ;;  %v777_v51 = vrot.slane %v2325_v0, 4 }
 0x18f   : > { %v2327_v2 = vpop.permute.xlu1 %680  ;;  %v2329_v3 = vpop.permute.xlu0 %664 }
 0x193   : > { %v2331_v4 = vpop.permute.xlu1 %712  ;;  %v2333_v6 = vpop.permute.xlu0 %696 }
 0x197   : > { %v2335_v7 = vpop.permute.xlu0 %728  ;;  %v635_v8 = vpop.permute.xlu1 %634 }
 0x198   : > { %v765_v53 = vrot.slane %v635_v8, 3  ;;  %v2395_v8 = vsel %vm755_vm10, %v754_v61, %v753_v56 }
 0x19b   : > { %v2337_v9 = vpop.permute.xlu1 %666  ;;  %v625_v10 = vpop.permute.xlu0 %624 }
 0x19c   : > { %v793_v63 = vrot.slane %v2337_v9, 3 }
 0x19f   : > { %v2339_v11 = vpop.permute.xlu1 %698  ;;  %v2341_v12 = vpop.permute.xlu0 %640 }
 0x1a3   : > { %v2343_v13 = vpop.permute.xlu1 %730  ;;  %v657_v14 = vpop.permute.xlu0 %656 }
 0x1a7   : > { %v2345_v15 = vpop.permute.xlu1 %652  ;;  %v673_v16 = vpop.permute.xlu0 %672 }
 0x1ab   : > { %v2347_v17 = vpop.permute.xlu1 %684  ;;  %v2349_v18 = vpop.permute.xlu0 %688 }
 0x1af   : > { %v2351_v19 = vpop.permute.xlu1 %716  ;;  %v2353_v20 = vpop.permute.xlu0 %704 }
 0x1b3   : > { %v2355_v21 = vpop.permute.xlu0 %720  ;;  %v659_v22 = vpop.permute.xlu1 %658 }
 0x1b4   : > { %v785_v57 = vrot.slane %v659_v22, 7  ;;  %v805_v22 = vrot.slane %v2327_v2, 4 }
 0x1b7   : > { %v2357_v23 = vpop.permute.xlu0 %650  ;;  %v675_v24 = vpop.permute.xlu1 %674 }
 0x1b8   : > { %v799_v62 = vrot.slane %v675_v24, 7  ;;  %v781_v24 = vrot.slane %v2345_v15, 2 }
 0x1bb   : > { %v2359_v25 = vpop.permute.xlu0 %682  ;;  %v2361_v26 = vpop.permute.xlu1 %706 }
 0x1bf   : > { %v2363_v27 = vpop.permute.xlu0 %714  ;;  %v629_v28 = vpop.permute.xlu1 %628 }
 0x1c0   : > { %v759_v45 = vrot.slane %v629_v28, 6  ;;  %v2063_v28 = vmov 1934713408  }
 0x1c3   : > { %v2365_v29 = vpop.permute.xlu0 %636  ;;  %v661_v30 = vpop.permute.xlu1 %660 }
 0x1c4   : > { %v787_v1 = vrot.slane %v661_v30, 6  ;;  %v786_v30 = vsel %vm737_vm4, %v785_v57, %v657_v14  ;;  %v767_v0 = vrot.slane %v2365_v29, 2 }
 0x1c7   : > { %v2367_v31 = vpop.permute.xlu0 %668  ;;  %v2369_v32 = vpop.permute.xlu1 %692 }
 0x1c8   : > { %v795_v15 = vrot.slane %v2367_v31, 2 }
 0x1cb   : > { %v2371_v33 = vpop.permute.xlu0 %700  ;;  %v2373_v34 = vpop.permute.xlu1 %724 }
 0x1cf   : > { %v2375_v35 = vpop.permute.xlu0 %732  ;;  %v2377_v36 = vpop.permute.xlu1 %638 }
 0x1d0   : > { %v769_v14 = vrot.slane %v2377_v36, 1 }
 0x1d3   : > { %v627_v37 = vpop.permute.xlu0 %626  ;;  %v2379_v38 = vpop.permute.xlu1 %670 }
 0x1d4   : > { %v757_v39 = vrot.slane %v627_v37, 7  ;;  %v2397_v37 = vunpack.c.l.s4 %v2063_v28  ;;  %v815_v28 = vrot.slane %v2369_v32, 6 }
 0x1d6   : > { %v758_v43 = vsel %vm737_vm4, %v757_v39, %v625_v10  ;;  %v791_v39 = vrot.slane %v2329_v3, 4  ;;  %v788_v3 = vsel %vm740_vm5, %v787_v1, %v786_v30  ;;  %v809_v30 = vrot.slane %v2347_v17, 2 }
 0x1d7   : > { %v643_v41 = vpop.permute.xlu0 %642  ;;  %v2381_v42 = vpop.permute.xlu1 %702  ;;  %v760_v52 = vsel %vm740_vm5, %v759_v45, %v758_v43  ;;  %v819_v43 = vrot.slane %v2333_v6, 4  ;;  %v931_v17 = vunpack.c.0.s8 %v2397_v37  ;;  %v835_v37 = vrot.slane %v2363_v27, 3 }
 0x1d8   : > { %v771_v10 = vrot.slane %v643_v41, 7  ;;  %v779_v41 = vrot.slane %v2357_v23, 3 }
 0x1da   : > { %v772_v6 = vsel %vm737_vm4, %v771_v10, %v2341_v12 }
 0x1db   : > { %v691_v46 = vpop.permute.xlu0 %690  ;;  %v631_v47 = vpop.permute.xlu1 %630 }
 0x1dc   : > { %v761_v48 = vrot.slane %v631_v47, 5  ;;  %v813_v9 = vrot.slane %v691_v46, 7 }
 0x1de   : > { %v762_v54 = vsel %vm743_vm6, %v761_v48, %v760_v52  ;;  %v800_v48 = vsel %vm737_vm4, %v799_v62, %v673_v16  ;;  %v797_v16 = vrot.slane %v2379_v38, 1 }
 0x1df   : > { %v764_v58 = vsel %vm746_vm7, %v763_v50, %v762_v54  ;;  %v2390_v59 = vpop.permute.xlu0 %722  ;;  %v647_v60 = vpop.permute.xlu1 %646 }
 0x1e0   : > { %v766_v55 = vsel %vm749_vm8, %v765_v53, %v764_v58  ;;  %v775_v50 = vrot.slane %v647_v60, 5  ;;  %v807_v58 = vrot.slane %v2359_v25, 3  ;;  %v814_v60 = vsel %vm737_vm4, %v813_v9, %v2349_v18 }
 0x1e1   : > { %v768_v29 = vsel %vm752_vm9, %v767_v0, %v766_v55  ;;  %v816_v0 = vsel %vm740_vm5, %v815_v28, %v814_v60 }
 0x1e2   : > { %v770_v1 = vsel %vm755_vm10, %v769_v14, %v768_v29  ;;  %v851_v29 = vrot.slane %v2375_v35, 2 }
 0x1e3   : > { %v645_v45 = vpop.permute.xlu0 %644  ;;  %v663_v47 = vpop.permute.xlu1 %662 }
 0x1e4   : > { %v773_v49 = vrot.slane %v645_v45, 6  ;;  %v789_v2 = vrot.slane %v663_v47, 5 }
 0x1e6   : > { %v774_v23 = vsel %vm740_vm5, %v773_v49, %v772_v6  ;;  %v790_v52 = vsel %vm743_vm6, %v789_v2, %v788_v3  ;;  %v821_v49 = vrot.slane %v2339_v11, 3  ;;  %v849_v6 = vrot.slane %v2343_v13, 3 }
 0x1e7   : > { %v776_v53 = vsel %vm743_vm6, %v775_v50, %v774_v23  ;;  %v792_v54 = vsel %vm746_vm7, %v791_v39, %v790_v52  ;;  %v677_v56 = vpop.permute.xlu0 %676  ;;  %v679_v12 = vpop.permute.xlu1 %678  ;;  %v837_v52 = vrot.slane %v2351_v19, 2  ;;  %v823_v13 = vrot.slane %v2371_v33, 2 }
 0x1e8   : > { %v778_v46 = vsel %vm746_vm7, %v777_v51, %v776_v53  ;;  %v794_v31 = vsel %vm749_vm8, %v793_v63, %v792_v54  ;;  %v801_v57 = vrot.slane %v677_v56, 6  ;;  %v803_v36 = vrot.slane %v679_v12, 5 }
 0x1e9   : > { %v796_v38 = vsel %vm752_vm9, %v795_v15, %v794_v31  ;;  %v780_v61 = vsel %vm749_vm8, %v779_v41, %v778_v46  ;;  %v827_v41 = vrot.slane %v2361_v26, 7  ;;  %v833_v26 = vrot.slane %v2331_v4, 4 }
 0x1ea   : > { %v802_v62 = vsel %vm740_vm5, %v801_v57, %v800_v48  ;;  %v782_v55 = vsel %vm752_vm9, %v781_v24, %v780_v61  ;;  %v798_v10 = vsel %vm755_vm10, %v797_v16, %v796_v38  ;;  %v841_v24 = vrot.slane %v2390_v59, 7 }
 0x1eb   : > { %v804_v51 = vsel %vm743_vm6, %v803_v36, %v802_v62  ;;  %v709_v25 = vpop.permute.xlu0 %708  ;;  %v695_v39 = vpop.permute.xlu1 %694  ;;  %v879_v63 = vcombine.low %v770_v1, %v798_v10  ;;  %v880_v18 = vcombine.high %v770_v1, %v798_v10  ;;  %v828_v15 = vsel %vm737_vm4, %v827_v41, %v2353_v20 }
 0x1ec   : > { %v806_v45 = vsel %vm746_vm7, %v805_v22, %v804_v51  ;;  %v817_v47 = vrot.slane %v695_v39, 5  ;;  %v829_v48 = vrot.slane %v709_v25, 6  ;;  %v847_v22 = vrot.slane %v2335_v7, 4 }
 0x1ed   : > { %v808_v32 = vsel %vm749_vm8, %v807_v58, %v806_v45  ;;  %v842_v4 = vsel %vm737_vm4, %v841_v24, %v2355_v21  ;;  %v894_v57 = vrot.slane %v880_v18, %v2195_v44 }
 0x1ee   : > { %v818_v2 = vsel %vm743_vm6, %v817_v47, %v816_v0  ;;  %v810_v3 = vsel %vm752_vm9, %v809_v30, %v808_v32  ;;  %v830_v7 = vsel %vm740_vm5, %v829_v48, %v828_v15  ;;  %v2481_v0 = vsub.s32 %v931_v17, %v2189_v40 }
 0x1ef   : > { %v820_v59 = vsel %vm746_vm7, %v819_v43, %v818_v2  ;;  %v655_v9 = vpop.permute.xlu0 %654  ;;  %v711_v50 = vpop.permute.xlu1 %710  ;;  %v843_v43 = vrot.slane %v2373_v34, 6  ;;  %v887_v34 = vrot.slane %v879_v63, %v2195_v44 }
 0x1f0   : > { %v822_v11 = vsel %vm749_vm8, %v821_v49, %v820_v59  ;;  %v783_v14 = vrot.slane %v655_v9, 1  ;;  %v831_v23 = vrot.slane %v711_v50, 5 }
 0x1f1   : > { %v844_v56 = vsel %vm740_vm5, %v843_v43, %v842_v4  ;;  %v824_v60 = vsel %vm752_vm9, %v823_v13, %v822_v11 }
 0x1f2   : > { %v784_v16 = vsel %vm755_vm10, %v783_v14, %v782_v55  ;;  %v832_v20 = vsel %vm743_vm6, %v831_v23, %v830_v7 }
 0x1f3   : > { %v863_v53 = vcombine.low %v2395_v8, %v784_v16  ;;  %v864_v19 = vcombine.high %v2395_v8, %v784_v16  ;;  %v834_v27 = vsel %vm746_vm7, %v833_v26, %v832_v20  ;;  %v687_v54 = vpop.permute.xlu0 %686  ;;  %v727_v21 = vpop.permute.xlu1 %726  ;;  %v825_v8 = vrot.slane %v2381_v42, 1 }
 0x1f4   : > { %v845_v12 = vrot.slane %v727_v21, 5  ;;  %v836_v33 = vsel %vm749_vm8, %v835_v37, %v834_v27  ;;  %v811_v36 = vrot.slane %v687_v54, 1 }
 0x1f5   : > { %v871_v46 = vrot.slane %v863_v53, %v2195_v44  ;;  %v878_v31 = vrot.slane %v864_v19, %v2195_v44  ;;  %v838_v35 = vsel %vm752_vm9, %v837_v52, %v836_v33  ;;  %v826_v30 = vsel %vm755_vm10, %v825_v8, %v824_v60 }
 0x1f6   : > { %v846_v58 = vsel %vm743_vm6, %v845_v12, %v844_v56  ;;  %v812_v42 = vsel %vm755_vm10, %v811_v36, %v810_v3 }
 0x1f7   : > { %v848_v38 = vsel %vm746_vm7, %v847_v22, %v846_v58  ;;  %v719_v61 = vpop.permute.xlu0 %718  ;;  %v735_v62 = vpop.permute.xlu1 %734  ;;  %v927_v55 = vcombine.low %v871_v46, %v887_v34  ;;  %v928_v1 = vcombine.high %v871_v46, %v887_v34  ;;  %v943_v10 = vcombine.low %v878_v31, %v894_v57 }
 0x1f8   : > { %v839_v28 = vrot.slane %v719_v61, 1  ;;  %v850_v51 = vsel %vm749_vm8, %v849_v6, %v848_v38  ;;  %v853_v25 = vrot.slane %v735_v62, 1  ;;  %v944_v39 = vcombine.high %v878_v31, %v894_v57 }
 0x1f9   : > { %v852_v63 = vsel %vm752_vm9, %v851_v29, %v850_v51  ;;  %v935_v9 = vrot.slane %v927_v55, %v2481_v0  ;;  %v942_v50 = vrot.slane %v928_v1, %v2481_v0  ;;  %v951_v14 = vrot.slane %v943_v10, %v2481_v0 }
 0x1fa   : > { %v840_v18 = vsel %vm755_vm10, %v839_v28, %v838_v35  ;;  %v854_v41 = vsel %vm755_vm10, %v853_v25, %v852_v63  ;;  %v958_v23 = vrot.slane %v944_v39, %v2481_v0  ;;  %vm1214_vm7 = vcmask 457728  }
 0x1fb   : > { %v895_v45 = vcombine.low %v812_v42, %v840_v18  ;;  %v896_v47 = vcombine.high %v812_v42, %v840_v18  ;;  %v911_v24 = vcombine.low %v826_v30, %v854_v41  ;;  %v912_v48 = vcombine.high %v826_v30, %v854_v41  ;;  %v1769_v18 = vld [vmem:[%s2676_s3 + $0x40] sm:$0xff]  ;;  %v1770_v30 = vld [vmem:[%s2676_s3 + $0x48] sm:$0xff] }
 0x1fd   : > { %v903_v32 = vrot.slane %v895_v45, %v2195_v44  ;;  %v910_v49 = vrot.slane %v896_v47, %v2195_v44  ;;  %v919_v2 = vrot.slane %v911_v24, %v2195_v44  ;;  %v926_v3 = vrot.slane %v912_v48, %v2195_v44 }
 0x1fe   : > { %v2065_v48 = vmov 0.0|0.0  }
 0x1ff   : > { %v959_v26 = vcombine.low %v903_v32, %v919_v2  ;;  %v960_v22 = vcombine.high %v903_v32, %v919_v2  ;;  %v975_v6 = vcombine.low %v910_v49, %v926_v3  ;;  %v976_v59 = vcombine.high %v910_v49, %v926_v3  ;;  %1981 = vmatprep.subr.bf16.mxu1 %v2065_v48 }
 0x200   : > { %v1982_v32 = vpack.c.bf16 %v1770_v30, %v1769_v18  ;;  %v1226_v18 = vld [vmem:[%s2676_s3 + $0x28] sm:$0xff] }
 0x201   : > { %v967_v15 = vrot.slane %v959_v26, %v2481_v0  ;;  %v974_v40 = vrot.slane %v960_v22, %v2481_v0  ;;  %v983_v17 = vrot.slane %v975_v6, %v2481_v0  ;;  %v990_v11 = vrot.slane %v976_v59, %v2481_v0  ;;  %v1771_v22 = vld [vmem:[%s2676_s3 + $0x50] sm:$0xff]  ;;  %v1772_v6 = vld [vmem:[%s2676_s3 + $0x58] sm:$0xff] }
 0x202   : > { %1983 = vmatpush3.bf16.msra.mxu1 %v1982_v32  ;;  %v1780_v32 = vld [vmem:[%s2676_s3 + $0x88] sm:$0xff] }
 0x203   : > { %v992_v52 = vcombine.high %v935_v9, %v967_v15  ;;  %v991_v37 = vcombine.low %v935_v9, %v967_v15  ;;  %v994_v4 = vcombine.high %v942_v50, %v974_v40  ;;  %v993_v7 = vcombine.low %v942_v50, %v974_v40  ;;  %1984 = vmatprep.subr.bf16.mxu1 %v2065_v48 }
 0x204   : > { %v996_v13 = vcombine.high %v951_v14, %v983_v17  ;;  %v995_v43 = vcombine.low %v951_v14, %v983_v17  ;;  %v998_v16 = vcombine.high %v958_v23, %v990_v11  ;;  %v997_v20 = vcombine.low %v958_v23, %v990_v11 }
 0x205   : > { %1009 = vrot.lane.b32.xlu1 %v992_v52, %s2064_s23  ;;  %1007 = vrot.lane.b32.xlu0 %v991_v37, %s2064_s23  ;;  %v1985_v40 = vpack.c.bf16 %v1772_v6, %v1771_v22  ;;  %v1783_v6 = vld [vmem:[%s2676_s3 + $0xa0] sm:$0xff] }
 0x207   : > { %1986 = vmatpush3.bf16.msra.mxu1 %v1985_v40 }
 0x208   : > { %1987 = vmatprep.subr.bf16.mxu1 %v2065_v48 }
 0x209   : > { %1013 = vrot.lane.b32.xlu1 %v994_v4, %s2064_s23  ;;  %1011 = vrot.lane.b32.xlu0 %v993_v7, %s2064_s23 }
 0x20d   : > { %1017 = vrot.lane.b32.xlu1 %v996_v13, %s2064_s23  ;;  %1015 = vrot.lane.b32.xlu0 %v995_v43, %s2064_s23 }
 0x211   : > { %1021 = vrot.lane.b32.xlu1 %v998_v16, %s2064_s23  ;;  %1019 = vrot.lane.b32.xlu0 %v997_v20, %s2064_s23 }
 0x277   : > { %v1010_v29 = vpop.permute.xlu1 %1009  ;;  %v1008_v53 = vpop.permute.xlu0 %1007 }
 0x278   : > { %v1032_v56 = vmax.f32 %v992_v52, %v1010_v29  ;;  %v1031_v12 = vmax.f32 %v991_v37, %v1008_v53  ;;  %v1773_v37 = vld [vmem:[%s2676_s3 + $0x60] sm:$0xff] }
 0x27b   : > { %v1014_v19 = vpop.permute.xlu1 %1013  ;;  %v1012_v27 = vpop.permute.xlu0 %1011 }
 0x27c   : > { %v1034_v54 = vmax.f32 %v994_v4, %v1014_v19  ;;  %v1033_v21 = vmax.f32 %v993_v7, %v1012_v27  ;;  %v1774_v4 = vld [vmem:[%s2676_s3 + $0x68] sm:$0xff] }
 0x27e   : > { %v1055_v33 = vcombine.low %v1032_v56, %v1034_v54  ;;  %v1039_v34 = vcombine.low %v1031_v12, %v1033_v21  ;;  %v1056_v35 = vcombine.high %v1032_v56, %v1034_v54  ;;  %v1040_v8 = vcombine.high %v1031_v12, %v1033_v21 }
 0x27f   : > { %v1018_v46 = vpop.permute.xlu1 %1017  ;;  %v1016_v31 = vpop.permute.xlu0 %1015 }
 0x280   : > { %v1063_v57 = vrot.slane %v1055_v33, %v2195_v44  ;;  %v1047_v36 = vrot.slane %v1039_v34, %v2195_v44  ;;  %v1036_v38 = vmax.f32 %v996_v13, %v1018_v46  ;;  %v1035_v61 = vmax.f32 %v995_v43, %v1016_v31 }
 0x281   : > { %v1070_v1 = vrot.slane %v1056_v35, %v2195_v44  ;;  %v1054_v39 = vrot.slane %v1040_v8, %v2195_v44  ;;  %v1988_v43 = vpack.c.bf16 %v1774_v4, %v1773_v37 }
 0x282   : > { %v1103_v63 = vcombine.low %v1047_v36, %v1063_v57  ;;  %v1104_v42 = vcombine.high %v1047_v36, %v1063_v57 }
 0x283   : > { %v1022_v58 = vpop.permute.xlu1 %1021  ;;  %v1020_v60 = vpop.permute.xlu0 %1019  ;;  %v1119_v26 = vcombine.low %v1054_v39, %v1070_v1  ;;  %v1120_v7 = vcombine.high %v1054_v39, %v1070_v1  ;;  %1989 = vmatpush3.bf16.msra.mxu1 %v1988_v43  ;;  %v1221_v1 = vld [vmem:[%s2676_s3] sm:$0xff] }
 0x284   : > { %v1038_v62 = vmax.f32 %v998_v16, %v1022_v58  ;;  %v1037_v55 = vmax.f32 %v997_v20, %v1020_v60  ;;  %v1118_v59 = vrot.slane %v1104_v42, %v2481_v0  ;;  %v1111_v50 = vrot.slane %v1103_v63, %v2481_v0  ;;  %v1775_v16 = vld [vmem:[%s2676_s3 + $0x70] sm:$0xff]  ;;  %v1776_v20 = vld [vmem:[%s2676_s3 + $0x78] sm:$0xff]  ;;  %1990 = vmatprep.subr.bf16.mxu1 %v2065_v48  ;;  %v1225_v42 = vld [vmem:[%s2676_s3 + $0x20] sm:$0xff] }
 0x285   : > { %v1127_v13 = vrot.slane %v1119_v26, %v2481_v0  ;;  %v1991_v27 = vpack.c.bf16 %v1776_v20, %v1775_v16  ;;  %v1134_v54 = vrot.slane %v1120_v7, %v2481_v0  ;;  %v2000_v30 = vpack.c.bf16 %v1226_v18, %v1225_v42  ;;  %v1788_v7 = vld [vmem:[%s2677_s4] ss:$0 sm:$0xff] }
 0x286   : > { %v1087_v10 = vcombine.low %v1036_v38, %v1038_v62  ;;  %v1088_v28 = vcombine.high %v1036_v38, %v1038_v62  ;;  %v1071_v51 = vcombine.low %v1035_v61, %v1037_v55  ;;  %v1072_v25 = vcombine.high %v1035_v61, %v1037_v55 }
 0x287   : > { %1992 = vmatpush3.bf16.msra.mxu1 %v1991_v27 }
 0x288   : > { %v1095_v41 = vrot.slane %v1087_v10, %v2195_v44  ;;  %v1102_v45 = vrot.slane %v1088_v28, %v2195_v44  ;;  %v1079_v47 = vrot.slane %v1071_v51, %v2195_v44  ;;  %v1086_v24 = vrot.slane %v1072_v25, %v2195_v44  ;;  %1993 = vmatprep.subr.bf16.mxu1 %v2065_v48  ;;  %v1222_v10 = vld [vmem:[%s2676_s3 + $0x8] sm:$0xff]  ;;  %v1223_v51 = vld [vmem:[%s2676_s3 + $0x10] sm:$0xff]  ;;  %v1224_v25 = vld [vmem:[%s2676_s3 + $0x18] sm:$0xff] }
 0x289   : > { %v1994_v28 = vpack.c.bf16 %v1222_v10, %v1221_v1  ;;  %v1997_v63 = vpack.c.bf16 %v1224_v25, %v1223_v51 }
 0x28a   : > { %v1135_v49 = vcombine.low %v1079_v47, %v1095_v41  ;;  %v1136_v2 = vcombine.high %v1079_v47, %v1095_v41  ;;  %v1151_v3 = vcombine.low %v1086_v24, %v1102_v45  ;;  %v1152_v17 = vcombine.high %v1086_v24, %v1102_v45  ;;  %v1227_v41 = vld [vmem:[%s2676_s3 + $0x30] sm:$0xff]  ;;  %v1228_v45 = vld [vmem:[%s2676_s3 + $0x38] sm:$0xff]  ;;  %v1779_v24 = vld [vmem:[%s2676_s3 + $0x80] sm:$0xff] }
 0x28b   : > { %v2003_v47 = vpack.c.bf16 %v1228_v45, %v1227_v41 }
 0x28c   : > { %v1150_v9 = vrot.slane %v1136_v2, %v2481_v0  ;;  %v1143_v15 = vrot.slane %v1135_v49, %v2481_v0  ;;  %v1159_v23 = vrot.slane %v1151_v3, %v2481_v0  ;;  %v1166_v19 = vrot.slane %v1152_v17, %v2481_v0  ;;  %v1781_v2 = vld [vmem:[%s2676_s3 + $0x90] sm:$0xff]  ;;  %v1782_v3 = vld [vmem:[%s2676_s3 + $0x98] sm:$0xff] }
 0x28d   : > { %v2006_v49 = vpack.c.bf16 %v1780_v32, %v1779_v24  ;;  %v2009_v22 = vpack.c.bf16 %v1782_v3, %v1781_v2 }
 0x28e   : > { %v1169_v11 = vcombine.low %v1118_v59, %v1150_v9  ;;  %v1168_v14 = vcombine.high %v1111_v50, %v1143_v15  ;;  %v1167_v52 = vcombine.low %v1111_v50, %v1143_v15  ;;  %v1171_v29 = vcombine.low %v1127_v13, %v1159_v23  ;;  %v1785_v50 = vld [vmem:[%s2676_s3 + $0xb0] sm:$0xff]  ;;  %v1786_v15 = vld [vmem:[%s2676_s3 + $0xb8] sm:$0xff] }
 0x28f   : > { %v1170_v53 = vcombine.high %v1118_v59, %v1150_v9  ;;  %v1173_v21 = vcombine.low %v1134_v54, %v1166_v19  ;;  %v1172_v56 = vcombine.high %v1127_v13, %v1159_v23  ;;  %v1174_v12 = vcombine.high %v1134_v54, %v1166_v19  ;;  %v1784_v59 = vld [vmem:[%s2676_s3 + $0xa8] sm:$0xff] }
 0x290   : > { %1180 = vrot.lane.b32.xlu1 %v1169_v11, %s2062_s22  ;;  %1176 = vrot.lane.b32.xlu0 %v1168_v14, %s2066_s11  ;;  %v2012_v9 = vpack.c.bf16 %v1784_v59, %v1783_v6  ;;  %v2015_v40 = vpack.c.bf16 %v1786_v15, %v1785_v50 }
 0x294   : > { %1188 = vrot.lane.b32.xlu1 %v1171_v29, %s2060_s20  ;;  %1184 = vrot.lane.b32.xlu0 %v1170_v53, %s2068_s24 }
 0x298   : > { %1196 = vrot.lane.b32.xlu1 %v1173_v21, %s2061_s21  ;;  %1192 = vrot.lane.b32.xlu0 %v1172_v56, %s2069_s25 }
 0x29c   : > { %1200 = vrot.lane.b32.xlu0 %v1174_v12, %s2070_s26 }
 0x302   : > { %v1181_v33 = vpop.permute.xlu1 %1180  ;;  %v1177_v34 = vpop.permute.xlu0 %1176 }
 0x303   : > { %v1204_v46 = vsel %vm1203_vm12, %v1167_v52, %v1177_v34 }
 0x304   : > { %v1206_v57 = vsel %vm1205_vm13, %v1204_v46, %v1181_v33 }
 0x306   : > { %v1189_v31 = vpop.permute.xlu1 %1188  ;;  %v1185_v35 = vpop.permute.xlu0 %1184 }
 0x307   : > { %v1208_v8 = vsel %vm1207_vm14, %v1206_v57, %v1185_v35 }
 0x308   : > { %v1210_v58 = vsel %vm1209_vm15, %v1208_v8, %v1189_v31 }
 0x30a   : > { %v1193_v36 = vpop.permute.xlu0 %1192  ;;  %v1197_v60 = vpop.permute.xlu1 %1196 }
 0x30b   : > { %v1212_v38 = vsel %vm1211_vm1, %v1210_v58, %v1193_v36 }
 0x30c   : > { %v1213_v62 = vsel %vm230_vm2, %v1212_v38, %v1197_v60 }
 0x30e   : > { %v1201_v61 = vpop.permute.xlu0 %1200 }
 0x30f   : > { %v1215_v55 = vsel %vm1214_vm7, %v1213_v62, %v1201_v61 }
 0x310   : > { %1219 = vst.msk [vmem:[#allocation2 + $0x1] sm:$0xff] %vm225_vm0, %v1215_v55 }
 0x317   : > { %v1229_v39 = vld [vmem:[#allocation2 + $0x1] sm:$0xff] }
 0x318   : > { %1905 = vmatmul.mubr.msk.f32.vlgmr.msra.gmra.mrb[0].mxu1 %vm225_vm0, %v1229_v39  ;;  %v1220_v26 = vld [vmem:[#allocation2] sm:$0xff] }
 0x319   : > { %1995 = vmatpush3.bf16.msra.mxu1 %v1994_v28  ;;  %1923 = vmatprep.mubr.msk.f32.mxu1 %vm2067_vm11, %v2054_v5  ;;  %v1385_v17 = vld [vmem:[#allocation2 + $0x2] sm:$0xff] }
 0x31a   : > { %1996 = vmatprep.subr.bf16.mxu1 %v2065_v48 }
 0x31d   : > { %1998 = vmatpush3.bf16.msra.mxu1 %v1997_v63 }
 0x31e   : > { %1999 = vmatprep.subr.bf16.mxu1 %v2065_v48 }
 0x321   : > { %2001 = vmatpush3.bf16.msra.mxu1 %v2000_v30 }
 0x322   : > { %2002 = vmatprep.subr.bf16.mxu1 %v2065_v48 }
 0x325   : > { %2004 = vmatpush3.bf16.msra.mxu1 %v2003_v47 }
 0x326   : > { %2005 = vmatprep.subr.bf16.mxu1 %v2065_v48 }
 0x328   : > { %1924 = vmatmul.mubr.msk.f32.vlgmr.msra.gmra.mrb[2].mxu1 %vm225_vm0, %v1220_v26 }
 0x329   : > { %2007 = vmatpush3.bf16.msra.mxu1 %v2006_v49  ;;  %1942 = vmatprep.mubr.msk.f32.mxu1 %vm2067_vm11, %v2054_v5 }
 0x32a   : > { %2008 = vmatprep.subr.bf16.mxu1 %v2065_v48 }
 0x32d   : > { %2010 = vmatpush3.bf16.msra.mxu1 %v2009_v22 }
 0x32e   : > { %2011 = vmatprep.subr.bf16.mxu1 %v2065_v48 }
 0x331   : > { %2013 = vmatpush3.bf16.msra.mxu1 %v2012_v9 }
 0x332   : > { %2014 = vmatprep.subr.bf16.mxu1 %v2065_v48 }
 0x335   : > { %2016 = vmatpush3.bf16.msra.mxu1 %v2015_v40 }
 0x338   : > { %1943 = vmatmul.mubr.msk.f32.vlgmr.msra.gmra.mrb[4].mxu1 %vm225_vm0, %v1385_v17  ;;  %vm1687_vm0 = vcmask 519168  }
 0x3eb   : > { %v1308_v11 = vpop.f32.mrb[0].mxu1 }
 0x3ec   : > { %v1906_v14 = vpop.f32.mrb[1].mxu1 }
 0x3fb   : > { %v1381_v23 = vpop.f32.mrb[2].mxu1 }
 0x3fc   : > { %v1382_v52 = vadd.f32 %v1381_v23, %v1308_v11  ;;  %v1925_v37 = vpop.f32.mrb[3].mxu1 }
 0x40b   : > { %v1464_v4 = vpop.f32.mrb[4].mxu1 }
 0x40c   : > { %v1468_v13 = vadd.f32 %v1464_v4, %v1382_v52  ;;  %v1944_v43 = vpop.f32.mrb[5].mxu1 }
 0x40e   : > { %v1476_v16 = vadd.f32 %v1788_v7, %v1468_v13 }
 0x410   : > { %v1477_v20 = vmax.f32 %v1476_v16, 0.0 }
 0x412   : > { %v1479_v29 = vcombine.high %v1477_v20, %v1477_v20  ;;  %v1486_v48 = vrot.slane %v1477_v20, %v2195_v44 }
 0x414   : > { %v1493_v53 = vrot.slane %v1479_v29, %v2195_v44  ;;  %v1494_v19 = vcombine.high %v1486_v48, %v1486_v48  ;;  %v1500_v27 = vsel %vm559_vm3, %v1486_v48, -inf }
 0x415   : > { %v1501_v54 = vrot.slane %v1500_v27, 4 }
 0x416   : > { %v1495_v21 = vcombine.high %v1493_v53, %v1493_v53  ;;  %v1507_v56 = vsel %vm559_vm3, %v1494_v19, -inf  ;;  %v1514_v12 = vsel %vm559_vm3, %v1493_v53, -inf }
 0x417   : > { %v1502_v33 = vmax.f32 %v1500_v27, %v1501_v54  ;;  %v1508_v34 = vrot.slane %v1507_v56, 4  ;;  %v1515_v46 = vrot.slane %v1514_v12, 4 }
 0x418   : > { %v1521_v31 = vsel %vm559_vm3, %v1495_v21, -inf }
 0x419   : > { %v1503_v35 = vrot.slane %v1502_v33, 2  ;;  %v1509_v57 = vmax.f32 %v1507_v56, %v1508_v34  ;;  %v1516_v8 = vmax.f32 %v1514_v12, %v1515_v46  ;;  %v1522_v36 = vrot.slane %v1521_v31, 4 }
 0x41b   : > { %v1504_v58 = vmax.f32 %v1502_v33, %v1503_v35  ;;  %v1510_v60 = vrot.slane %v1509_v57, 2  ;;  %v1517_v38 = vrot.slane %v1516_v8, 2  ;;  %v1523_v61 = vmax.f32 %v1521_v31, %v1522_v36 }
 0x41d   : > { %v1505_v62 = vrot.slane %v1504_v58, 1  ;;  %v1511_v55 = vmax.f32 %v1509_v57, %v1510_v60  ;;  %v1518_v1 = vmax.f32 %v1516_v8, %v1517_v38  ;;  %v1524_v10 = vrot.slane %v1523_v61, 2 }
 0x41f   : > { %v1506_v28 = vmax.f32 %v1504_v58, %v1505_v62  ;;  %v1512_v51 = vrot.slane %v1511_v55, 1  ;;  %v1519_v25 = vrot.slane %v1518_v1, 1  ;;  %v1525_v39 = vmax.f32 %v1523_v61, %v1524_v10 }
 0x421   : > { %1532 = vrot.lane.b32.xlu1 %v1506_v28, %s2056_s14  ;;  %v1513_v63 = vmax.f32 %v1511_v55, %v1512_v51  ;;  %v1520_v42 = vmax.f32 %v1518_v1, %v1519_v25  ;;  %v1526_v18 = vrot.slane %v1525_v39, 1 }
 0x423   : > { %1542 = vrot.lane.b32.xlu0 %v1513_v63, %s2058_s16  ;;  %v1556_v30 = vrot.slane %v1513_v63, 7  ;;  %v1527_v41 = vmax.f32 %v1525_v39, %v1526_v18  ;;  %v1558_v45 = vrot.slane %v1520_v42, 6 }
 0x425   : > { %1540 = vrot.lane.b32.xlu1 %v1506_v28, %s2058_s16  ;;  %v1557_v47 = vsel %vm737_vm4, %v1556_v30, %v1506_v28  ;;  %v1560_v24 = vrot.slane %v1527_v41, 5 }
 0x426   : > { %v1559_v32 = vsel %vm740_vm5, %v1558_v45, %v1557_v47 }
 0x427   : > { %1536 = vrot.lane.b32.xlu0 %v1520_v42, %s2056_s14  ;;  %v1561_v49 = vsel %vm743_vm6, %v1560_v24, %v1559_v32 }
 0x429   : > { %1534 = vrot.lane.b32.xlu1 %v1513_v63, %s2056_s14 }
 0x42b   : > { %1552 = vrot.lane.b32.xlu0 %v1520_v42, %s2060_s20 }
 0x42d   : > { %1550 = vrot.lane.b32.xlu1 %v1513_v63, %s2060_s20 }
 0x42f   : > { %1538 = vrot.lane.b32.xlu0 %v1527_v41, %s2056_s14  ;;  %s1749_s14 = sshll.u32 %s2680_s19, 2 }
 0x430   : > { %s222_s27 = scalar_lea.vmem %s2678_s5, %s1749_s14 }
 0x431   : > { %1544 = vrot.lane.b32.xlu1 %v1520_v42, %s2058_s16 }
 0x433   : > { %1546 = vrot.lane.b32.xlu0 %v1527_v41, %s2058_s16 }
 0x435   : > { %1548 = vrot.lane.b32.xlu1 %v1506_v28, %s2060_s20 }
 0x437   : > { %1554 = vrot.lane.b32.xlu0 %v1527_v41, %s2060_s20 }
 0x493   : > { %v1533_v2 = vpop.permute.xlu1 %1532 }
 0x495   : > { %v1543_v3 = vpop.permute.xlu0 %1542 }
 0x496   : > { %v1568_v50 = vrot.slane %v1543_v3, 7 }
 0x497   : > { %v1541_v26 = vpop.permute.xlu1 %1540 }
 0x498   : > { %v1569_v14 = vsel %vm737_vm4, %v1568_v50, %v1541_v26 }
 0x499   : > { %v1537_v22 = vpop.permute.xlu0 %1536 }
 0x49a   : > { %v1564_v29 = vrot.slane %v1537_v22, 6 }
 0x49b   : > { %v1535_v6 = vpop.permute.xlu1 %1534 }
 0x49c   : > { %v1562_v17 = vrot.slane %v1535_v6, 7 }
 0x49d   : > { %v1553_v59 = vpop.permute.xlu0 %1552 }
 0x49e   : > { %v1563_v13 = vsel %vm737_vm4, %v1562_v17, %v1533_v2  ;;  %v1576_v48 = vrot.slane %v1553_v59, 6 }
 0x49f   : > { %v1551_v9 = vpop.permute.xlu1 %1550  ;;  %v1565_v27 = vsel %vm740_vm5, %v1564_v29, %v1563_v13 }
 0x4a0   : > { %v1574_v52 = vrot.slane %v1551_v9, 7 }
 0x4a1   : > { %v1539_v15 = vpop.permute.xlu0 %1538 }
 0x4a2   : > { %v1566_v43 = vrot.slane %v1539_v15, 5 }
 0x4a3   : > { %v1545_v40 = vpop.permute.xlu1 %1544 }
 0x4a4   : > { %v1570_v11 = vrot.slane %v1545_v40, 6  ;;  %v1567_v56 = vsel %vm743_vm6, %v1566_v43, %v1565_v27 }
 0x4a5   : > { %v1547_v23 = vpop.permute.xlu0 %1546 }
 0x4a6   : > { %v1571_v37 = vsel %vm740_vm5, %v1570_v11, %v1569_v14  ;;  %v1572_v4 = vrot.slane %v1547_v23, 5 }
 0x4a7   : > { %v1549_v7 = vpop.permute.xlu1 %1548 }
 0x4a8   : > { %v1573_v16 = vsel %vm743_vm6, %v1572_v4, %v1571_v37  ;;  %v1575_v20 = vsel %vm737_vm4, %v1574_v52, %v1549_v7 }
 0x4a9   : > { %v1555_v53 = vpop.permute.xlu0 %1554  ;;  %v1584_v54 = vcombine.low %v1561_v49, %v1573_v16  ;;  %v1577_v21 = vsel %vm740_vm5, %v1576_v48, %v1575_v20 }
 0x4aa   : > { %v1578_v19 = vrot.slane %v1555_v53, 5 }
 0x4ab   : > { %v1591_v34 = vrot.slane %v1584_v54, %v2195_v44 }
 0x4ac   : > { %v1579_v12 = vsel %vm743_vm6, %v1578_v19, %v1577_v21 }
 0x4ad   : > { %v1592_v33 = vcombine.low %v1567_v56, %v1579_v12 }
 0x4af   : > { %v1599_v46 = vrot.slane %v1592_v33, %v2195_v44 }
 0x4b1   : > { %v1600_v31 = vcombine.low %v1591_v34, %v1599_v46  ;;  %v1601_v35 = vcombine.high %v1591_v34, %v1599_v46 }
 0x4b3   : > { %v1608_v57 = vrot.slane %v1600_v31, %v2481_v0  ;;  %v1615_v36 = vrot.slane %v1601_v35, %v2481_v0 }
 0x4b5   : > { %1622 = vrot.lane.b32.xlu1 %v1608_v57, %s2057_s15  ;;  %v1616_v8 = vcombine.high %v1608_v57, %v2054_v5  ;;  %v1617_v58 = vcombine.high %v1615_v36, %v2054_v5 }
 0x4b7   : > { %1624 = vrot.lane.b32.xlu0 %v1616_v8, %s2057_s15 }
 0x4b9   : > { %1626 = vrot.lane.b32.xlu1 %v1615_v36, %s2057_s15 }
 0x4bb   : > { %1628 = vrot.lane.b32.xlu0 %v1617_v58, %s2057_s15 }
 0x527   : > { %v1623_v60 = vpop.permute.xlu1 %1622 }
 0x528   : > { %v1634_v62 = vmax.f32 %v1608_v57, %v1623_v60 }
 0x529   : > { %v1625_v38 = vpop.permute.xlu0 %1624 }
 0x52a   : > { %v1635_v10 = vmax.f32 %v1616_v8, %v1625_v38 }
 0x52b   : > { %v1627_v61 = vpop.permute.xlu1 %1626 }
 0x52c   : > { %v1636_v55 = vmax.f32 %v1615_v36, %v1627_v61 }
 0x52d   : > { %v1629_v1 = vpop.permute.xlu0 %1628 }
 0x52e   : > { %v1638_v28 = vcombine.low %v1634_v62, %v1636_v55  ;;  %v1637_v51 = vmax.f32 %v1617_v58, %v1629_v1 }
 0x530   : > { %v1646_v25 = vcombine.low %v1635_v10, %v1637_v51  ;;  %v1645_v39 = vrot.slane %v1638_v28, %v2195_v44 }
 0x532   : > { %v1653_v63 = vrot.slane %v1646_v25, %v2195_v44 }
 0x534   : > { %v1654_v42 = vcombine.low %v1645_v39, %v1653_v63  ;;  %v1655_v18 = vcombine.high %v1645_v39, %v1653_v63 }
 0x536   : > { %v1669_v30 = vrot.slane %v1655_v18, %v2481_v0  ;;  %v1662_v41 = vrot.slane %v1654_v42, %v2481_v0 }
 0x538   : > { %1677 = vrot.lane.b32.xlu0 %v1669_v30, %s2060_s20  ;;  %v1670_v45 = vcombine.high %v1662_v41, %v2054_v5  ;;  %v1671_v47 = vcombine.high %v1669_v30, %v2054_v5 }
 0x53a   : > { %1673 = vrot.lane.b32.xlu1 %v1670_v45, %s2062_s22 }
 0x53e   : > { %1681 = vrot.lane.b32.xlu1 %v1671_v47, %s2061_s21 }
 0x5aa   : > { %v1678_v32 = vpop.permute.xlu0 %1677 }
 0x5ac   : > { %v1674_v24 = vpop.permute.xlu1 %1673 }
 0x5ad   : > { %v1684_v44 = vsel %vm1205_vm13, %v1662_v41, %v1674_v24 }
 0x5ae   : > { %v1685_v0 = vsel %vm1209_vm15, %v1684_v44, %v1678_v32 }
 0x5b0   : > { %v1682_v49 = vpop.permute.xlu1 %1681 }
 0x5b1   : > { %v1686_v2 = vsel %vm230_vm2, %v1685_v0, %v1682_v49 }
 0x5b2   : > { %1688 = vst.msk [vmem:[%s222_s27] sm:$0xf] %vm1687_vm0, %v1686_v2 }
 0x5b3 PF: > { %s15_s18 = sadd.s32 1, %s2052_s18  }
 0x5b4   : > { %p12_p4 = scmp.ge.s32.totalorder %s15_s18, 4  }
 0x5b6   :  { %14 = sbr.rel (!%p12_p4) target bundleno = 1 (0x1), region = 74 }

</bundles_post_ra>
